<compile_context>
chip_gen: v7x
topology: tpu7x:2x2x1
jax: 0.10.0
libtpu: 0.0.40
codegen_flags: <defaults>
</compile_context>

<pallas_src>
import math
import functools

import jax
import jax.numpy as jnp
from jax import lax
from jax.experimental import pallas as pl
from jax.experimental.pallas import tpu as pltpu


def _mha_fused_kernel(x_ref, wqkv_ref, bqkv_ref, ww_ref, bw_ref,
                      out_ref, attn_ref, vperm_ref,
                      *, batch, seq_len, n_heads, d_h):
    B, L, H = batch, seq_len, n_heads
    D = H * d_h

    # One fused projection: [q|k|v] (B*L, 3D) @ block-diag(w_q,w_k,w_v) (3D,3D)
    # -> [qp|kp|vp] (B*L, 3D).  Single MXU push, 96-lane output.
    proj = jnp.dot(x_ref[...], wqkv_ref[...],
                   preferred_element_type=jnp.float32) + bqkv_ref[...]
    qp = proj[:, 0:D]                       # (B*L, D) static lane slices
    kp = proj[:, D:2 * D]
    vp = proj[:, 2 * D:3 * D]

    scale = math.sqrt(d_h)

    for h in range(H):                      # static unroll, H is small
        c0 = h * d_h
        qh = qp[:, c0:c0 + d_h]             # (B*L, d_h)
        kh = kp[:, c0:c0 + d_h]
        # One MXU push per head covering BOTH batch elements; contract on d_h
        # directly (no explicit k transpose).  Cross-batch blocks are computed
        # but sliced away below (trivial waste at these sizes).
        s_all = lax.dot_general(qh, kh, (((1,), (1,)), ((), ())),
                                preferred_element_type=jnp.float32)  # (B*L, B*L)

        for b in range(B):
            r0 = b * L
            # PyTorch `attn // math.sqrt(d_h)` floors toward -inf.
            s = jnp.floor(s_all[r0:r0 + L, r0:r0 + L] / scale)        # (L, L)
            m = jnp.max(s, axis=-1, keepdims=True)
            e = jnp.exp(s - m)                                        # f32
            p = e / jnp.sum(e, axis=-1, keepdims=True)                # exact norm
            attn_ref[r0:r0 + L, h * L:(h + 1) * L] = p

            # Head-permuted value projection (reference bug: this, not attn@v,
            # feeds w_w).  Equivalent to torch .transpose(1,2).contiguous()
            # .view(B, L, D): element (h, l, :) of the per-batch (H, L, d_h)
            # tensor lands at flat offset (h*L + l)*d_h of its (L, D) view.
            # Built with static (1, d_h) stores into VMEM scratch (the
            # sublane<->lane exchange has no reliably-lowering value-level
            # reshape at these sub-tile sizes).
            for l in range(L):
                flat = (h * L + l) * d_h
                r, c = flat // D, flat % D
                vperm_ref[r0 + r:r0 + r + 1, c:c + d_h] = \
                    vp[r0 + l:r0 + l + 1, c0:c0 + d_h]

    out_ref[...] = jnp.dot(vperm_ref[...], ww_ref[...],
                           preferred_element_type=jnp.float32) + bw_ref[...]


@functools.partial(jax.jit, static_argnums=(4,))
def multi_head_attention(q, k, v, params, n_heads):
    B, L, D = q.shape
    assert D % n_heads == 0
    d_h = D // n_heads

    # Wrapper-side layout plumbing (free, fused by XLA):
    #  - lane-concatenate q|k|v so the kernel gets one (B*L, 3D) activation,
    #  - build the block-diagonal QKV weight and fused bias,
    #  - reshape biases to (1, D)-style rows for broadcast adds.
    x = jnp.concatenate([q, k, v], axis=-1).reshape(B * L, 3 * D)
    w_qkv = jnp.zeros((3 * D, 3 * D), jnp.float32)
    w_qkv = (w_qkv.at[0:D, 0:D].set(params["w_q"])
                  .at[D:2 * D, D:2 * D].set(params["w_k"])
                  .at[2 * D:3 * D, 2 * D:3 * D].set(params["w_v"]))
    b_qkv = jnp.concatenate(
        [params["b_q"], params["b_k"], params["b_v"]]).reshape(1, 3 * D)
    b_w = params["b_w"].reshape(1, D)

    kernel = functools.partial(_mha_fused_kernel, batch=B, seq_len=L,
                               n_heads=n_heads, d_h=d_h)

    # Grid-less pallas_call: whole (tiny) arrays live in VMEM for one step.
    out_flat, attn_slab = pl.pallas_call(
        kernel,
        out_shape=(
            jax.ShapeDtypeStruct((B * L, D), jnp.float32),
            jax.ShapeDtypeStruct((B * L, n_heads * L), jnp.float32),
        ),
        scratch_shapes=[pltpu.VMEM((B * L, D), jnp.float32)],
    )(x, w_qkv, b_qkv, params["w_w"], b_w)

    # (B*L, D) -> (B, L, D);  (B*L, H*L) slab -> (B, H, L, L).  Free in jit.
    out = out_flat.reshape(B, L, D)
    attn = attn_slab.reshape(B, L, n_heads, L).transpose(0, 2, 1, 3)
    return out, attn


def init_params(key, d_model):
    # nn.Linear(d_model, d_model): weight (out, in), bias (out,).
    # Weight stored pre-transposed as (in, out) so y = x @ W + b.
    keys = jax.random.split(key, 8)

    def lin(kw, kb):
        w = (jax.random.normal(kw, (d_model, d_model), jnp.float32) * 0.1).T
        b = jax.random.normal(kb, (d_model,), jnp.float32) * 0.1
        return w, b

    w_q, b_q = lin(keys[0], keys[1])
    w_k, b_k = lin(keys[2], keys[3])
    w_v, b_v = lin(keys[4], keys[5])
    w_w, b_w = lin(keys[6], keys[7])
    return dict(w_q=w_q, b_q=b_q, w_k=w_k, b_k=b_k,
                w_v=w_v, b_v=b_v, w_w=w_w, b_w=b_w)


if __name__ == "__main__":
    B, L, D, H = 2, 8, 32, 4   # batch, max_len, d_model, n_heads

    root = jax.random.PRNGKey(0)
    k_params, k_q, k_k, k_v = jax.random.split(root, 4)
    params = init_params(k_params, D)

    q = jax.random.normal(k_q, (B, L, D), jnp.float32)
    k = jax.random.normal(k_k, (B, L, D), jnp.float32)
    v = jax.random.normal(k_v, (B, L, D), jnp.float32)

    out, attn = multi_head_attention(q, k, v, params, H)
    jax.block_until_ready((out, attn))

    assert out.shape == (B, L, D)
    assert attn.shape == (B, H, L, L)
    print("KERNEL_OK")
</pallas_src>

<mosaic_0001>
module attributes {stable_mosaic.version = 11 : i64} {
  func.func @_mha_fused_kernel(%arg0: memref<16x96xf32, #tpu.memory_space<vmem>>, %arg1: memref<96x96xf32, #tpu.memory_space<vmem>>, %arg2: memref<1x96xf32, #tpu.memory_space<vmem>>, %arg3: memref<32x32xf32, #tpu.memory_space<vmem>>, %arg4: memref<1x32xf32, #tpu.memory_space<vmem>>, %arg5: memref<16x32xf32, #tpu.memory_space<vmem>>, %arg6: memref<16x32xf32, #tpu.memory_space<vmem>>, %arg7: memref<16x32xf32, #tpu.memory_space<vmem>>) attributes {dimension_semantics = [], scalar_prefetch = 0 : i64, scratch_operands = 1 : i64, tpu.core_type = #tpu.core_type<tc>} {
    %c0 = arith.constant 0 : index
    %c0_0 = arith.constant 0 : index
    %0 = vector.load %arg0[%c0, %c0_0] : memref<16x96xf32, #tpu.memory_space<vmem>>, vector<16x96xf32>
    %c0_1 = arith.constant 0 : index
    %c0_2 = arith.constant 0 : index
    %1 = vector.load %arg1[%c0_1, %c0_2] : memref<96x96xf32, #tpu.memory_space<vmem>>, vector<96x96xf32>
    %cst = arith.constant dense<0.000000e+00> : vector<16x96xf32>
    %2 = tpu.matmul %0, %1, %cst {dimension_numbers = #tpu.dot_dimension_numbers<[1], [0], [0], [1], [0, 0, 1, 1], [], []>} : vector<16x96xf32>, vector<96x96xf32>, vector<16x96xf32> -> vector<16x96xf32>
    %c0_3 = arith.constant 0 : index
    %c0_4 = arith.constant 0 : index
    %3 = vector.load %arg2[%c0_3, %c0_4] : memref<1x96xf32, #tpu.memory_space<vmem>>, vector<1x96xf32>
    %4 = vector.broadcast %3 : vector<1x96xf32> to vector<16x96xf32>
    %5 = arith.addf %2, %4 : vector<16x96xf32>
    %6 = vector.extract_strided_slice %5 {offsets = [0, 0], sizes = [16, 32], strides = [1, 1]} : vector<16x96xf32> to vector<16x32xf32>
    %7 = vector.extract_strided_slice %5 {offsets = [0, 32], sizes = [16, 32], strides = [1, 1]} : vector<16x96xf32> to vector<16x32xf32>
    %8 = vector.extract_strided_slice %5 {offsets = [0, 64], sizes = [16, 32], strides = [1, 1]} : vector<16x96xf32> to vector<16x32xf32>
    %9 = vector.extract_strided_slice %6 {offsets = [0, 0], sizes = [16, 8], strides = [1, 1]} : vector<16x32xf32> to vector<16x8xf32>
    %10 = vector.extract_strided_slice %7 {offsets = [0, 0], sizes = [16, 8], strides = [1, 1]} : vector<16x32xf32> to vector<16x8xf32>
    %cst_5 = arith.constant dense<0.000000e+00> : vector<16x16xf32>
    %11 = tpu.matmul %9, %10, %cst_5 {dimension_numbers = #tpu.dot_dimension_numbers<[1], [1], [0], [0], [0, 0, 1, 0], [], []>} : vector<16x8xf32>, vector<16x8xf32>, vector<16x16xf32> -> vector<16x16xf32>
    %12 = vector.extract_strided_slice %11 {offsets = [0, 0], sizes = [8, 8], strides = [1, 1]} : vector<16x16xf32> to vector<8x8xf32>
    %cst_6 = arith.constant 2.82842708 : f32
    %13 = vector.broadcast %cst_6 : f32 to vector<8x8xf32>
    %14 = arith.divf %12, %13 : vector<8x8xf32>
    %15 = math.floor %14 : vector<8x8xf32>
    %cst_7 = arith.constant dense<0xFF800000> : vector<8xf32>
    %16 = vector.multi_reduction <maximumf>, %15, %cst_7 [1] : vector<8x8xf32> to vector<8xf32>
    %17 = vector.shape_cast %16 : vector<8xf32> to vector<8x1xf32>
    %18 = vector.broadcast %17 : vector<8x1xf32> to vector<8x8xf32>
    %19 = arith.subf %15, %18 : vector<8x8xf32>
    %20 = math.exp %19 : vector<8x8xf32>
    %cst_8 = arith.constant dense<0.000000e+00> : vector<8xf32>
    %21 = vector.multi_reduction <add>, %20, %cst_8 [1] : vector<8x8xf32> to vector<8xf32>
    %22 = vector.shape_cast %21 : vector<8xf32> to vector<8x1xf32>
    %23 = vector.broadcast %22 : vector<8x1xf32> to vector<8x8xf32>
    %24 = arith.divf %20, %23 : vector<8x8xf32>
    %c0_9 = arith.constant 0 : index
    %c0_10 = arith.constant 0 : index
    %25 = vector.load %arg6[%c0_9, %c0_10] : memref<16x32xf32, #tpu.memory_space<vmem>>, vector<8x8xf32>
    tpu.vector_store %arg6[%c0_9, %c0_10], %24 {strides = array<i32>} : memref<16x32xf32, #tpu.memory_space<vmem>>, vector<8x8xf32>,
    %26 = vector.extract_strided_slice %8 {offsets = [0, 0], sizes = [1, 8], strides = [1, 1]} : vector<16x32xf32> to vector<1x8xf32>
    %c0_11 = arith.constant 0 : index
    %c0_12 = arith.constant 0 : index
    %27 = vector.load %arg7[%c0_11, %c0_12] : memref<16x32xf32, #tpu.memory_space<vmem>>, vector<1x8xf32>
    tpu.vector_store %arg7[%c0_11, %c0_12], %26 {strides = array<i32>} : memref<16x32xf32, #tpu.memory_space<vmem>>, vector<1x8xf32>,
    %28 = vector.extract_strided_slice %8 {offsets = [1, 0], sizes = [1, 8], strides = [1, 1]} : vector<16x32xf32> to vector<1x8xf32>
    %c0_13 = arith.constant 0 : index
    %c8 = arith.constant 8 : index
    %29 = vector.load %arg7[%c0_13, %c8] : memref<16x32xf32, #tpu.memory_space<vmem>>, vector<1x8xf32>
    tpu.vector_store %arg7[%c0_13, %c8], %28 {strides = array<i32>} : memref<16x32xf32, #tpu.memory_space<vmem>>, vector<1x8xf32>,
    %30 = vector.extract_strided_slice %8 {offsets = [2, 0], sizes = [1, 8], strides = [1, 1]} : vector<16x32xf32> to vector<1x8xf32>
    %c0_14 = arith.constant 0 : index
    %c16 = arith.constant 16 : index
    %31 = vector.load %arg7[%c0_14, %c16] : memref<16x32xf32, #tpu.memory_space<vmem>>, vector<1x8xf32>
    tpu.vector_store %arg7[%c0_14, %c16], %30 {strides = array<i32>} : memref<16x32xf32, #tpu.memory_space<vmem>>, vector<1x8xf32>,
    %32 = vector.extract_strided_slice %8 {offsets = [3, 0], sizes = [1, 8], strides = [1, 1]} : vector<16x32xf32> to vector<1x8xf32>
    %c0_15 = arith.constant 0 : index
    %c24 = arith.constant 24 : index
    %33 = vector.load %arg7[%c0_15, %c24] : memref<16x32xf32, #tpu.memory_space<vmem>>, vector<1x8xf32>
    tpu.vector_store %arg7[%c0_15, %c24], %32 {strides = array<i32>} : memref<16x32xf32, #tpu.memory_space<vmem>>, vector<1x8xf32>,
    %34 = vector.extract_strided_slice %8 {offsets = [4, 0], sizes = [1, 8], strides = [1, 1]} : vector<16x32xf32> to vector<1x8xf32>
    %c1 = arith.constant 1 : index
    %c0_16 = arith.constant 0 : index
    %35 = vector.load %arg7[%c1, %c0_16] : memref<16x32xf32, #tpu.memory_space<vmem>>, vector<1x8xf32>
    tpu.vector_store %arg7[%c1, %c0_16], %34 {strides = array<i32>} : memref<16x32xf32, #tpu.memory_space<vmem>>, vector<1x8xf32>,
    %36 = vector.extract_strided_slice %8 {offsets = [5, 0], sizes = [1, 8], strides = [1, 1]} : vector<16x32xf32> to vector<1x8xf32>
    %c1_17 = arith.constant 1 : index
    %c8_18 = arith.constant 8 : index
    %37 = vector.load %arg7[%c1_17, %c8_18] : memref<16x32xf32, #tpu.memory_space<vmem>>, vector<1x8xf32>
    tpu.vector_store %arg7[%c1_17, %c8_18], %36 {strides = array<i32>} : memref<16x32xf32, #tpu.memory_space<vmem>>, vector<1x8xf32>,
    %38 = vector.extract_strided_slice %8 {offsets = [6, 0], sizes = [1, 8], strides = [1, 1]} : vector<16x32xf32> to vector<1x8xf32>
    %c1_19 = arith.constant 1 : index
    %c16_20 = arith.constant 16 : index
    %39 = vector.load %arg7[%c1_19, %c16_20] : memref<16x32xf32, #tpu.memory_space<vmem>>, vector<1x8xf32>
    tpu.vector_store %arg7[%c1_19, %c16_20], %38 {strides = array<i32>} : memref<16x32xf32, #tpu.memory_space<vmem>>, vector<1x8xf32>,
    %40 = vector.extract_strided_slice %8 {offsets = [7, 0], sizes = [1, 8], strides = [1, 1]} : vector<16x32xf32> to vector<1x8xf32>
    %c1_21 = arith.constant 1 : index
    %c24_22 = arith.constant 24 : index
    %41 = vector.load %arg7[%c1_21, %c24_22] : memref<16x32xf32, #tpu.memory_space<vmem>>, vector<1x8xf32>
    tpu.vector_store %arg7[%c1_21, %c24_22], %40 {strides = array<i32>} : memref<16x32xf32, #tpu.memory_space<vmem>>, vector<1x8xf32>,
    %42 = vector.extract_strided_slice %11 {offsets = [8, 8], sizes = [8, 8], strides = [1, 1]} : vector<16x16xf32> to vector<8x8xf32>
    %cst_23 = arith.constant 2.82842708 : f32
    %43 = vector.broadcast %cst_23 : f32 to vector<8x8xf32>
    %44 = arith.divf %42, %43 : vector<8x8xf32>
    %45 = math.floor %44 : vector<8x8xf32>
    %cst_24 = arith.constant dense<0xFF800000> : vector<8xf32>
    %46 = vector.multi_reduction <maximumf>, %45, %cst_24 [1] : vector<8x8xf32> to vector<8xf32>
    %47 = vector.shape_cast %46 : vector<8xf32> to vector<8x1xf32>
    %48 = vector.broadcast %47 : vector<8x1xf32> to vector<8x8xf32>
    %49 = arith.subf %45, %48 : vector<8x8xf32>
    %50 = math.exp %49 : vector<8x8xf32>
    %cst_25 = arith.constant dense<0.000000e+00> : vector<8xf32>
    %51 = vector.multi_reduction <add>, %50, %cst_25 [1] : vector<8x8xf32> to vector<8xf32>
    %52 = vector.shape_cast %51 : vector<8xf32> to vector<8x1xf32>
    %53 = vector.broadcast %52 : vector<8x1xf32> to vector<8x8xf32>
    %54 = arith.divf %50, %53 : vector<8x8xf32>
    %c8_26 = arith.constant 8 : index
    %c0_27 = arith.constant 0 : index
    %55 = vector.load %arg6[%c8_26, %c0_27] : memref<16x32xf32, #tpu.memory_space<vmem>>, vector<8x8xf32>
    tpu.vector_store %arg6[%c8_26, %c0_27], %54 {strides = array<i32>} : memref<16x32xf32, #tpu.memory_space<vmem>>, vector<8x8xf32>,
    %56 = vector.extract_strided_slice %8 {offsets = [8, 0], sizes = [1, 8], strides = [1, 1]} : vector<16x32xf32> to vector<1x8xf32>
    %c8_28 = arith.constant 8 : index
    %c0_29 = arith.constant 0 : index
    %57 = vector.load %arg7[%c8_28, %c0_29] : memref<16x32xf32, #tpu.memory_space<vmem>>, vector<1x8xf32>
    tpu.vector_store %arg7[%c8_28, %c0_29], %56 {strides = array<i32>} : memref<16x32xf32, #tpu.memory_space<vmem>>, vector<1x8xf32>,
    %58 = vector.extract_strided_slice %8 {offsets = [9, 0], sizes = [1, 8], strides = [1, 1]} : vector<16x32xf32> to vector<1x8xf32>
    %c8_30 = arith.constant 8 : index
    %c8_31 = arith.constant 8 : index
    %59 = vector.load %arg7[%c8_30, %c8_31] : memref<16x32xf32, #tpu.memory_space<vmem>>, vector<1x8xf32>
    tpu.vector_store %arg7[%c8_30, %c8_31], %58 {strides = array<i32>} : memref<16x32xf32, #tpu.memory_space<vmem>>, vector<1x8xf32>,
    %60 = vector.extract_strided_slice %8 {offsets = [10, 0], sizes = [1, 8], strides = [1, 1]} : vector<16x32xf32> to vector<1x8xf32>
    %c8_32 = arith.constant 8 : index
    %c16_33 = arith.constant 16 : index
    %61 = vector.load %arg7[%c8_32, %c16_33] : memref<16x32xf32, #tpu.memory_space<vmem>>, vector<1x8xf32>
    tpu.vector_store %arg7[%c8_32, %c16_33], %60 {strides = array<i32>} : memref<16x32xf32, #tpu.memory_space<vmem>>, vector<1x8xf32>,
    %62 = vector.extract_strided_slice %8 {offsets = [11, 0], sizes = [1, 8], strides = [1, 1]} : vector<16x32xf32> to vector<1x8xf32>
    %c8_34 = arith.constant 8 : index
    %c24_35 = arith.constant 24 : index
    %63 = vector.load %arg7[%c8_34, %c24_35] : memref<16x32xf32, #tpu.memory_space<vmem>>, vector<1x8xf32>
    tpu.vector_store %arg7[%c8_34, %c24_35], %62 {strides = array<i32>} : memref<16x32xf32, #tpu.memory_space<vmem>>, vector<1x8xf32>,
    %64 = vector.extract_strided_slice %8 {offsets = [12, 0], sizes = [1, 8], strides = [1, 1]} : vector<16x32xf32> to vector<1x8xf32>
    %c9 = arith.constant 9 : index
    %c0_36 = arith.constant 0 : index
    %65 = vector.load %arg7[%c9, %c0_36] : memref<16x32xf32, #tpu.memory_space<vmem>>, vector<1x8xf32>
    tpu.vector_store %arg7[%c9, %c0_36], %64 {strides = array<i32>} : memref<16x32xf32, #tpu.memory_space<vmem>>, vector<1x8xf32>,
    %66 = vector.extract_strided_slice %8 {offsets = [13, 0], sizes = [1, 8], strides = [1, 1]} : vector<16x32xf32> to vector<1x8xf32>
    %c9_37 = arith.constant 9 : index
    %c8_38 = arith.constant 8 : index
    %67 = vector.load %arg7[%c9_37, %c8_38] : memref<16x32xf32, #tpu.memory_space<vmem>>, vector<1x8xf32>
    tpu.vector_store %arg7[%c9_37, %c8_38], %66 {strides = array<i32>} : memref<16x32xf32, #tpu.memory_space<vmem>>, vector<1x8xf32>,
    %68 = vector.extract_strided_slice %8 {offsets = [14, 0], sizes = [1, 8], strides = [1, 1]} : vector<16x32xf32> to vector<1x8xf32>
    %c9_39 = arith.constant 9 : index
    %c16_40 = arith.constant 16 : index
    %69 = vector.load %arg7[%c9_39, %c16_40] : memref<16x32xf32, #tpu.memory_space<vmem>>, vector<1x8xf32>
    tpu.vector_store %arg7[%c9_39, %c16_40], %68 {strides = array<i32>} : memref<16x32xf32, #tpu.memory_space<vmem>>, vector<1x8xf32>,
    %70 = vector.extract_strided_slice %8 {offsets = [15, 0], sizes = [1, 8], strides = [1, 1]} : vector<16x32xf32> to vector<1x8xf32>
    %c9_41 = arith.constant 9 : index
    %c24_42 = arith.constant 24 : index
    %71 = vector.load %arg7[%c9_41, %c24_42] : memref<16x32xf32, #tpu.memory_space<vmem>>, vector<1x8xf32>
    tpu.vector_store %arg7[%c9_41, %c24_42], %70 {strides = array<i32>} : memref<16x32xf32, #tpu.memory_space<vmem>>, vector<1x8xf32>,
    %72 = vector.extract_strided_slice %6 {offsets = [0, 8], sizes = [16, 8], strides = [1, 1]} : vector<16x32xf32> to vector<16x8xf32>
    %73 = vector.extract_strided_slice %7 {offsets = [0, 8], sizes = [16, 8], strides = [1, 1]} : vector<16x32xf32> to vector<16x8xf32>
    %cst_43 = arith.constant dense<0.000000e+00> : vector<16x16xf32>
    %74 = tpu.matmul %72, %73, %cst_43 {dimension_numbers = #tpu.dot_dimension_numbers<[1], [1], [0], [0], [0, 0, 1, 0], [], []>} : vector<16x8xf32>, vector<16x8xf32>, vector<16x16xf32> -> vector<16x16xf32>
    %75 = vector.extract_strided_slice %74 {offsets = [0, 0], sizes = [8, 8], strides = [1, 1]} : vector<16x16xf32> to vector<8x8xf32>
    %cst_44 = arith.constant 2.82842708 : f32
    %76 = vector.broadcast %cst_44 : f32 to vector<8x8xf32>
    %77 = arith.divf %75, %76 : vector<8x8xf32>
    %78 = math.floor %77 : vector<8x8xf32>
    %cst_45 = arith.constant dense<0xFF800000> : vector<8xf32>
    %79 = vector.multi_reduction <maximumf>, %78, %cst_45 [1] : vector<8x8xf32> to vector<8xf32>
    %80 = vector.shape_cast %79 : vector<8xf32> to vector<8x1xf32>
    %81 = vector.broadcast %80 : vector<8x1xf32> to vector<8x8xf32>
    %82 = arith.subf %78, %81 : vector<8x8xf32>
    %83 = math.exp %82 : vector<8x8xf32>
    %cst_46 = arith.constant dense<0.000000e+00> : vector<8xf32>
    %84 = vector.multi_reduction <add>, %83, %cst_46 [1] : vector<8x8xf32> to vector<8xf32>
    %85 = vector.shape_cast %84 : vector<8xf32> to vector<8x1xf32>
    %86 = vector.broadcast %85 : vector<8x1xf32> to vector<8x8xf32>
    %87 = arith.divf %83, %86 : vector<8x8xf32>
    %c0_47 = arith.constant 0 : index
    %c8_48 = arith.constant 8 : index
    %88 = vector.load %arg6[%c0_47, %c8_48] : memref<16x32xf32, #tpu.memory_space<vmem>>, vector<8x8xf32>
    tpu.vector_store %arg6[%c0_47, %c8_48], %87 {strides = array<i32>} : memref<16x32xf32, #tpu.memory_space<vmem>>, vector<8x8xf32>,
    %89 = vector.extract_strided_slice %8 {offsets = [0, 8], sizes = [1, 8], strides = [1, 1]} : vector<16x32xf32> to vector<1x8xf32>
    %c2 = arith.constant 2 : index
    %c0_49 = arith.constant 0 : index
    %90 = vector.load %arg7[%c2, %c0_49] : memref<16x32xf32, #tpu.memory_space<vmem>>, vector<1x8xf32>
    tpu.vector_store %arg7[%c2, %c0_49], %89 {strides = array<i32>} : memref<16x32xf32, #tpu.memory_space<vmem>>, vector<1x8xf32>,
    %91 = vector.extract_strided_slice %8 {offsets = [1, 8], sizes = [1, 8], strides = [1, 1]} : vector<16x32xf32> to vector<1x8xf32>
    %c2_50 = arith.constant 2 : index
    %c8_51 = arith.constant 8 : index
    %92 = vector.load %arg7[%c2_50, %c8_51] : memref<16x32xf32, #tpu.memory_space<vmem>>, vector<1x8xf32>
    tpu.vector_store %arg7[%c2_50, %c8_51], %91 {strides = array<i32>} : memref<16x32xf32, #tpu.memory_space<vmem>>, vector<1x8xf32>,
    %93 = vector.extract_strided_slice %8 {offsets = [2, 8], sizes = [1, 8], strides = [1, 1]} : vector<16x32xf32> to vector<1x8xf32>
    %c2_52 = arith.constant 2 : index
    %c16_53 = arith.constant 16 : index
    %94 = vector.load %arg7[%c2_52, %c16_53] : memref<16x32xf32, #tpu.memory_space<vmem>>, vector<1x8xf32>
    tpu.vector_store %arg7[%c2_52, %c16_53], %93 {strides = array<i32>} : memref<16x32xf32, #tpu.memory_space<vmem>>, vector<1x8xf32>,
    %95 = vector.extract_strided_slice %8 {offsets = [3, 8], sizes = [1, 8], strides = [1, 1]} : vector<16x32xf32> to vector<1x8xf32>
    %c2_54 = arith.constant 2 : index
    %c24_55 = arith.constant 24 : index
    %96 = vector.load %arg7[%c2_54, %c24_55] : memref<16x32xf32, #tpu.memory_space<vmem>>, vector<1x8xf32>
    tpu.vector_store %arg7[%c2_54, %c24_55], %95 {strides = array<i32>} : memref<16x32xf32, #tpu.memory_space<vmem>>, vector<1x8xf32>,
    %97 = vector.extract_strided_slice %8 {offsets = [4, 8], sizes = [1, 8], strides = [1, 1]} : vector<16x32xf32> to vector<1x8xf32>
    %c3 = arith.constant 3 : index
    %c0_56 = arith.constant 0 : index
    %98 = vector.load %arg7[%c3, %c0_56] : memref<16x32xf32, #tpu.memory_space<vmem>>, vector<1x8xf32>
    tpu.vector_store %arg7[%c3, %c0_56], %97 {strides = array<i32>} : memref<16x32xf32, #tpu.memory_space<vmem>>, vector<1x8xf32>,
    %99 = vector.extract_strided_slice %8 {offsets = [5, 8], sizes = [1, 8], strides = [1, 1]} : vector<16x32xf32> to vector<1x8xf32>
    %c3_57 = arith.constant 3 : index
    %c8_58 = arith.constant 8 : index
    %100 = vector.load %arg7[%c3_57, %c8_58] : memref<16x32xf32, #tpu.memory_space<vmem>>, vector<1x8xf32>
    tpu.vector_store %arg7[%c3_57, %c8_58], %99 {strides = array<i32>} : memref<16x32xf32, #tpu.memory_space<vmem>>, vector<1x8xf32>,
    %101 = vector.extract_strided_slice %8 {offsets = [6, 8], sizes = [1, 8], strides = [1, 1]} : vector<16x32xf32> to vector<1x8xf32>
    %c3_59 = arith.constant 3 : index
    %c16_60 = arith.constant 16 : index
    %102 = vector.load %arg7[%c3_59, %c16_60] : memref<16x32xf32, #tpu.memory_space<vmem>>, vector<1x8xf32>
    tpu.vector_store %arg7[%c3_59, %c16_60], %101 {strides = array<i32>} : memref<16x32xf32, #tpu.memory_space<vmem>>, vector<1x8xf32>,
    %103 = vector.extract_strided_slice %8 {offsets = [7, 8], sizes = [1, 8], strides = [1, 1]} : vector<16x32xf32> to vector<1x8xf32>
    %c3_61 = arith.constant 3 : index
    %c24_62 = arith.constant 24 : index
    %104 = vector.load %arg7[%c3_61, %c24_62] : memref<16x32xf32, #tpu.memory_space<vmem>>, vector<1x8xf32>
    tpu.vector_store %arg7[%c3_61, %c24_62], %103 {strides = array<i32>} : memref<16x32xf32, #tpu.memory_space<vmem>>, vector<1x8xf32>,
    %105 = vector.extract_strided_slice %74 {offsets = [8, 8], sizes = [8, 8], strides = [1, 1]} : vector<16x16xf32> to vector<8x8xf32>
    %cst_63 = arith.constant 2.82842708 : f32
    %106 = vector.broadcast %cst_63 : f32 to vector<8x8xf32>
    %107 = arith.divf %105, %106 : vector<8x8xf32>
    %108 = math.floor %107 : vector<8x8xf32>
    %cst_64 = arith.constant dense<0xFF800000> : vector<8xf32>
    %109 = vector.multi_reduction <maximumf>, %108, %cst_64 [1] : vector<8x8xf32> to vector<8xf32>
    %110 = vector.shape_cast %109 : vector<8xf32> to vector<8x1xf32>
    %111 = vector.broadcast %110 : vector<8x1xf32> to vector<8x8xf32>
    %112 = arith.subf %108, %111 : vector<8x8xf32>
    %113 = math.exp %112 : vector<8x8xf32>
    %cst_65 = arith.constant dense<0.000000e+00> : vector<8xf32>
    %114 = vector.multi_reduction <add>, %113, %cst_65 [1] : vector<8x8xf32> to vector<8xf32>
    %115 = vector.shape_cast %114 : vector<8xf32> to vector<8x1xf32>
    %116 = vector.broadcast %115 : vector<8x1xf32> to vector<8x8xf32>
    %117 = arith.divf %113, %116 : vector<8x8xf32>
    %c8_66 = arith.constant 8 : index
    %c8_67 = arith.constant 8 : index
    %118 = vector.load %arg6[%c8_66, %c8_67] : memref<16x32xf32, #tpu.memory_space<vmem>>, vector<8x8xf32>
    tpu.vector_store %arg6[%c8_66, %c8_67], %117 {strides = array<i32>} : memref<16x32xf32, #tpu.memory_space<vmem>>, vector<8x8xf32>,
    %119 = vector.extract_strided_slice %8 {offsets = [8, 8], sizes = [1, 8], strides = [1, 1]} : vector<16x32xf32> to vector<1x8xf32>
    %c10 = arith.constant 10 : index
    %c0_68 = arith.constant 0 : index
    %120 = vector.load %arg7[%c10, %c0_68] : memref<16x32xf32, #tpu.memory_space<vmem>>, vector<1x8xf32>
    tpu.vector_store %arg7[%c10, %c0_68], %119 {strides = array<i32>} : memref<16x32xf32, #tpu.memory_space<vmem>>, vector<1x8xf32>,
    %121 = vector.extract_strided_slice %8 {offsets = [9, 8], sizes = [1, 8], strides = [1, 1]} : vector<16x32xf32> to vector<1x8xf32>
    %c10_69 = arith.constant 10 : index
    %c8_70 = arith.constant 8 : index
    %122 = vector.load %arg7[%c10_69, %c8_70] : memref<16x32xf32, #tpu.memory_space<vmem>>, vector<1x8xf32>
    tpu.vector_store %arg7[%c10_69, %c8_70], %121 {strides = array<i32>} : memref<16x32xf32, #tpu.memory_space<vmem>>, vector<1x8xf32>,
    %123 = vector.extract_strided_slice %8 {offsets = [10, 8], sizes = [1, 8], strides = [1, 1]} : vector<16x32xf32> to vector<1x8xf32>
    %c10_71 = arith.constant 10 : index
    %c16_72 = arith.constant 16 : index
    %124 = vector.load %arg7[%c10_71, %c16_72] : memref<16x32xf32, #tpu.memory_space<vmem>>, vector<1x8xf32>
    tpu.vector_store %arg7[%c10_71, %c16_72], %123 {strides = array<i32>} : memref<16x32xf32, #tpu.memory_space<vmem>>, vector<1x8xf32>,
    %125 = vector.extract_strided_slice %8 {offsets = [11, 8], sizes = [1, 8], strides = [1, 1]} : vector<16x32xf32> to vector<1x8xf32>
    %c10_73 = arith.constant 10 : index
    %c24_74 = arith.constant 24 : index
    %126 = vector.load %arg7[%c10_73, %c24_74] : memref<16x32xf32, #tpu.memory_space<vmem>>, vector<1x8xf32>
    tpu.vector_store %arg7[%c10_73, %c24_74], %125 {strides = array<i32>} : memref<16x32xf32, #tpu.memory_space<vmem>>, vector<1x8xf32>,
    %127 = vector.extract_strided_slice %8 {offsets = [12, 8], sizes = [1, 8], strides = [1, 1]} : vector<16x32xf32> to vector<1x8xf32>
    %c11 = arith.constant 11 : index
    %c0_75 = arith.constant 0 : index
    %128 = vector.load %arg7[%c11, %c0_75] : memref<16x32xf32, #tpu.memory_space<vmem>>, vector<1x8xf32>
    tpu.vector_store %arg7[%c11, %c0_75], %127 {strides = array<i32>} : memref<16x32xf32, #tpu.memory_space<vmem>>, vector<1x8xf32>,
    %129 = vector.extract_strided_slice %8 {offsets = [13, 8], sizes = [1, 8], strides = [1, 1]} : vector<16x32xf32> to vector<1x8xf32>
    %c11_76 = arith.constant 11 : index
    %c8_77 = arith.constant 8 : index
    %130 = vector.load %arg7[%c11_76, %c8_77] : memref<16x32xf32, #tpu.memory_space<vmem>>, vector<1x8xf32>
    tpu.vector_store %arg7[%c11_76, %c8_77], %129 {strides = array<i32>} : memref<16x32xf32, #tpu.memory_space<vmem>>, vector<1x8xf32>,
    %131 = vector.extract_strided_slice %8 {offsets = [14, 8], sizes = [1, 8], strides = [1, 1]} : vector<16x32xf32> to vector<1x8xf32>
    %c11_78 = arith.constant 11 : index
    %c16_79 = arith.constant 16 : index
    %132 = vector.load %arg7[%c11_78, %c16_79] : memref<16x32xf32, #tpu.memory_space<vmem>>, vector<1x8xf32>
    tpu.vector_store %arg7[%c11_78, %c16_79], %131 {strides = array<i32>} : memref<16x32xf32, #tpu.memory_space<vmem>>, vector<1x8xf32>,
    %133 = vector.extract_strided_slice %8 {offsets = [15, 8], sizes = [1, 8], strides = [1, 1]} : vector<16x32xf32> to vector<1x8xf32>
    %c11_80 = arith.constant 11 : index
    %c24_81 = arith.constant 24 : index
    %134 = vector.load %arg7[%c11_80, %c24_81] : memref<16x32xf32, #tpu.memory_space<vmem>>, vector<1x8xf32>
    tpu.vector_store %arg7[%c11_80, %c24_81], %133 {strides = array<i32>} : memref<16x32xf32, #tpu.memory_space<vmem>>, vector<1x8xf32>,
    %135 = vector.extract_strided_slice %6 {offsets = [0, 16], sizes = [16, 8], strides = [1, 1]} : vector<16x32xf32> to vector<16x8xf32>
    %136 = vector.extract_strided_slice %7 {offsets = [0, 16], sizes = [16, 8], strides = [1, 1]} : vector<16x32xf32> to vector<16x8xf32>
    %cst_82 = arith.constant dense<0.000000e+00> : vector<16x16xf32>
    %137 = tpu.matmul %135, %136, %cst_82 {dimension_numbers = #tpu.dot_dimension_numbers<[1], [1], [0], [0], [0, 0, 1, 0], [], []>} : vector<16x8xf32>, vector<16x8xf32>, vector<16x16xf32> -> vector<16x16xf32>
    %138 = vector.extract_strided_slice %137 {offsets = [0, 0], sizes = [8, 8], strides = [1, 1]} : vector<16x16xf32> to vector<8x8xf32>
    %cst_83 = arith.constant 2.82842708 : f32
    %139 = vector.broadcast %cst_83 : f32 to vector<8x8xf32>
    %140 = arith.divf %138, %139 : vector<8x8xf32>
    %141 = math.floor %140 : vector<8x8xf32>
    %cst_84 = arith.constant dense<0xFF800000> : vector<8xf32>
    %142 = vector.multi_reduction <maximumf>, %141, %cst_84 [1] : vector<8x8xf32> to vector<8xf32>
    %143 = vector.shape_cast %142 : vector<8xf32> to vector<8x1xf32>
    %144 = vector.broadcast %143 : vector<8x1xf32> to vector<8x8xf32>
    %145 = arith.subf %141, %144 : vector<8x8xf32>
    %146 = math.exp %145 : vector<8x8xf32>
    %cst_85 = arith.constant dense<0.000000e+00> : vector<8xf32>
    %147 = vector.multi_reduction <add>, %146, %cst_85 [1] : vector<8x8xf32> to vector<8xf32>
    %148 = vector.shape_cast %147 : vector<8xf32> to vector<8x1xf32>
    %149 = vector.broadcast %148 : vector<8x1xf32> to vector<8x8xf32>
    %150 = arith.divf %146, %149 : vector<8x8xf32>
    %c0_86 = arith.constant 0 : index
    %c16_87 = arith.constant 16 : index
    %151 = vector.load %arg6[%c0_86, %c16_87] : memref<16x32xf32, #tpu.memory_space<vmem>>, vector<8x8xf32>
    tpu.vector_store %arg6[%c0_86, %c16_87], %150 {strides = array<i32>} : memref<16x32xf32, #tpu.memory_space<vmem>>, vector<8x8xf32>,
    %152 = vector.extract_strided_slice %8 {offsets = [0, 16], sizes = [1, 8], strides = [1, 1]} : vector<16x32xf32> to vector<1x8xf32>
    %c4 = arith.constant 4 : index
    %c0_88 = arith.constant 0 : index
    %153 = vector.load %arg7[%c4, %c0_88] : memref<16x32xf32, #tpu.memory_space<vmem>>, vector<1x8xf32>
    tpu.vector_store %arg7[%c4, %c0_88], %152 {strides = array<i32>} : memref<16x32xf32, #tpu.memory_space<vmem>>, vector<1x8xf32>,
    %154 = vector.extract_strided_slice %8 {offsets = [1, 16], sizes = [1, 8], strides = [1, 1]} : vector<16x32xf32> to vector<1x8xf32>
    %c4_89 = arith.constant 4 : index
    %c8_90 = arith.constant 8 : index
    %155 = vector.load %arg7[%c4_89, %c8_90] : memref<16x32xf32, #tpu.memory_space<vmem>>, vector<1x8xf32>
    tpu.vector_store %arg7[%c4_89, %c8_90], %154 {strides = array<i32>} : memref<16x32xf32, #tpu.memory_space<vmem>>, vector<1x8xf32>,
    %156 = vector.extract_strided_slice %8 {offsets = [2, 16], sizes = [1, 8], strides = [1, 1]} : vector<16x32xf32> to vector<1x8xf32>
    %c4_91 = arith.constant 4 : index
    %c16_92 = arith.constant 16 : index
    %157 = vector.load %arg7[%c4_91, %c16_92] : memref<16x32xf32, #tpu.memory_space<vmem>>, vector<1x8xf32>
    tpu.vector_store %arg7[%c4_91, %c16_92], %156 {strides = array<i32>} : memref<16x32xf32, #tpu.memory_space<vmem>>, vector<1x8xf32>,
    %158 = vector.extract_strided_slice %8 {offsets = [3, 16], sizes = [1, 8], strides = [1, 1]} : vector<16x32xf32> to vector<1x8xf32>
    %c4_93 = arith.constant 4 : index
    %c24_94 = arith.constant 24 : index
    %159 = vector.load %arg7[%c4_93, %c24_94] : memref<16x32xf32, #tpu.memory_space<vmem>>, vector<1x8xf32>
    tpu.vector_store %arg7[%c4_93, %c24_94], %158 {strides = array<i32>} : memref<16x32xf32, #tpu.memory_space<vmem>>, vector<1x8xf32>,
    %160 = vector.extract_strided_slice %8 {offsets = [4, 16], sizes = [1, 8], strides = [1, 1]} : vector<16x32xf32> to vector<1x8xf32>
    %c5 = arith.constant 5 : index
    %c0_95 = arith.constant 0 : index
    %161 = vector.load %arg7[%c5, %c0_95] : memref<16x32xf32, #tpu.memory_space<vmem>>, vector<1x8xf32>
    tpu.vector_store %arg7[%c5, %c0_95], %160 {strides = array<i32>} : memref<16x32xf32, #tpu.memory_space<vmem>>, vector<1x8xf32>,
    %162 = vector.extract_strided_slice %8 {offsets = [5, 16], sizes = [1, 8], strides = [1, 1]} : vector<16x32xf32> to vector<1x8xf32>
    %c5_96 = arith.constant 5 : index
    %c8_97 = arith.constant 8 : index
    %163 = vector.load %arg7[%c5_96, %c8_97] : memref<16x32xf32, #tpu.memory_space<vmem>>, vector<1x8xf32>
    tpu.vector_store %arg7[%c5_96, %c8_97], %162 {strides = array<i32>} : memref<16x32xf32, #tpu.memory_space<vmem>>, vector<1x8xf32>,
    %164 = vector.extract_strided_slice %8 {offsets = [6, 16], sizes = [1, 8], strides = [1, 1]} : vector<16x32xf32> to vector<1x8xf32>
    %c5_98 = arith.constant 5 : index
    %c16_99 = arith.constant 16 : index
    %165 = vector.load %arg7[%c5_98, %c16_99] : memref<16x32xf32, #tpu.memory_space<vmem>>, vector<1x8xf32>
    tpu.vector_store %arg7[%c5_98, %c16_99], %164 {strides = array<i32>} : memref<16x32xf32, #tpu.memory_space<vmem>>, vector<1x8xf32>,
    %166 = vector.extract_strided_slice %8 {offsets = [7, 16], sizes = [1, 8], strides = [1, 1]} : vector<16x32xf32> to vector<1x8xf32>
    %c5_100 = arith.constant 5 : index
    %c24_101 = arith.constant 24 : index
    %167 = vector.load %arg7[%c5_100, %c24_101] : memref<16x32xf32, #tpu.memory_space<vmem>>, vector<1x8xf32>
    tpu.vector_store %arg7[%c5_100, %c24_101], %166 {strides = array<i32>} : memref<16x32xf32, #tpu.memory_space<vmem>>, vector<1x8xf32>,
    %168 = vector.extract_strided_slice %137 {offsets = [8, 8], sizes = [8, 8], strides = [1, 1]} : vector<16x16xf32> to vector<8x8xf32>
    %cst_102 = arith.constant 2.82842708 : f32
    %169 = vector.broadcast %cst_102 : f32 to vector<8x8xf32>
    %170 = arith.divf %168, %169 : vector<8x8xf32>
    %171 = math.floor %170 : vector<8x8xf32>
    %cst_103 = arith.constant dense<0xFF800000> : vector<8xf32>
    %172 = vector.multi_reduction <maximumf>, %171, %cst_103 [1] : vector<8x8xf32> to vector<8xf32>
    %173 = vector.shape_cast %172 : vector<8xf32> to vector<8x1xf32>
    %174 = vector.broadcast %173 : vector<8x1xf32> to vector<8x8xf32>
    %175 = arith.subf %171, %174 : vector<8x8xf32>
    %176 = math.exp %175 : vector<8x8xf32>
    %cst_104 = arith.constant dense<0.000000e+00> : vector<8xf32>
    %177 = vector.multi_reduction <add>, %176, %cst_104 [1] : vector<8x8xf32> to vector<8xf32>
    %178 = vector.shape_cast %177 : vector<8xf32> to vector<8x1xf32>
    %179 = vector.broadcast %178 : vector<8x1xf32> to vector<8x8xf32>
    %180 = arith.divf %176, %179 : vector<8x8xf32>
    %c8_105 = arith.constant 8 : index
    %c16_106 = arith.constant 16 : index
    %181 = vector.load %arg6[%c8_105, %c16_106] : memref<16x32xf32, #tpu.memory_space<vmem>>, vector<8x8xf32>
    tpu.vector_store %arg6[%c8_105, %c16_106], %180 {strides = array<i32>} : memref<16x32xf32, #tpu.memory_space<vmem>>, vector<8x8xf32>,
    %182 = vector.extract_strided_slice %8 {offsets = [8, 16], sizes = [1, 8], strides = [1, 1]} : vector<16x32xf32> to vector<1x8xf32>
    %c12 = arith.constant 12 : index
    %c0_107 = arith.constant 0 : index
    %183 = vector.load %arg7[%c12, %c0_107] : memref<16x32xf32, #tpu.memory_space<vmem>>, vector<1x8xf32>
    tpu.vector_store %arg7[%c12, %c0_107], %182 {strides = array<i32>} : memref<16x32xf32, #tpu.memory_space<vmem>>, vector<1x8xf32>,
    %184 = vector.extract_strided_slice %8 {offsets = [9, 16], sizes = [1, 8], strides = [1, 1]} : vector<16x32xf32> to vector<1x8xf32>
    %c12_108 = arith.constant 12 : index
    %c8_109 = arith.constant 8 : index
    %185 = vector.load %arg7[%c12_108, %c8_109] : memref<16x32xf32, #tpu.memory_space<vmem>>, vector<1x8xf32>
    tpu.vector_store %arg7[%c12_108, %c8_109], %184 {strides = array<i32>} : memref<16x32xf32, #tpu.memory_space<vmem>>, vector<1x8xf32>,
    %186 = vector.extract_strided_slice %8 {offsets = [10, 16], sizes = [1, 8], strides = [1, 1]} : vector<16x32xf32> to vector<1x8xf32>
    %c12_110 = arith.constant 12 : index
    %c16_111 = arith.constant 16 : index
    %187 = vector.load %arg7[%c12_110, %c16_111] : memref<16x32xf32, #tpu.memory_space<vmem>>, vector<1x8xf32>
    tpu.vector_store %arg7[%c12_110, %c16_111], %186 {strides = array<i32>} : memref<16x32xf32, #tpu.memory_space<vmem>>, vector<1x8xf32>,
    %188 = vector.extract_strided_slice %8 {offsets = [11, 16], sizes = [1, 8], strides = [1, 1]} : vector<16x32xf32> to vector<1x8xf32>
    %c12_112 = arith.constant 12 : index
    %c24_113 = arith.constant 24 : index
    %189 = vector.load %arg7[%c12_112, %c24_113] : memref<16x32xf32, #tpu.memory_space<vmem>>, vector<1x8xf32>
    tpu.vector_store %arg7[%c12_112, %c24_113], %188 {strides = array<i32>} : memref<16x32xf32, #tpu.memory_space<vmem>>, vector<1x8xf32>,
    %190 = vector.extract_strided_slice %8 {offsets = [12, 16], sizes = [1, 8], strides = [1, 1]} : vector<16x32xf32> to vector<1x8xf32>
    %c13 = arith.constant 13 : index
    %c0_114 = arith.constant 0 : index
    %191 = vector.load %arg7[%c13, %c0_114] : memref<16x32xf32, #tpu.memory_space<vmem>>, vector<1x8xf32>
    tpu.vector_store %arg7[%c13, %c0_114], %190 {strides = array<i32>} : memref<16x32xf32, #tpu.memory_space<vmem>>, vector<1x8xf32>,
    %192 = vector.extract_strided_slice %8 {offsets = [13, 16], sizes = [1, 8], strides = [1, 1]} : vector<16x32xf32> to vector<1x8xf32>
    %c13_115 = arith.constant 13 : index
    %c8_116 = arith.constant 8 : index
    %193 = vector.load %arg7[%c13_115, %c8_116] : memref<16x32xf32, #tpu.memory_space<vmem>>, vector<1x8xf32>
    tpu.vector_store %arg7[%c13_115, %c8_116], %192 {strides = array<i32>} : memref<16x32xf32, #tpu.memory_space<vmem>>, vector<1x8xf32>,
    %194 = vector.extract_strided_slice %8 {offsets = [14, 16], sizes = [1, 8], strides = [1, 1]} : vector<16x32xf32> to vector<1x8xf32>
    %c13_117 = arith.constant 13 : index
    %c16_118 = arith.constant 16 : index
    %195 = vector.load %arg7[%c13_117, %c16_118] : memref<16x32xf32, #tpu.memory_space<vmem>>, vector<1x8xf32>
    tpu.vector_store %arg7[%c13_117, %c16_118], %194 {strides = array<i32>} : memref<16x32xf32, #tpu.memory_space<vmem>>, vector<1x8xf32>,
    %196 = vector.extract_strided_slice %8 {offsets = [15, 16], sizes = [1, 8], strides = [1, 1]} : vector<16x32xf32> to vector<1x8xf32>
    %c13_119 = arith.constant 13 : index
    %c24_120 = arith.constant 24 : index
    %197 = vector.load %arg7[%c13_119, %c24_120] : memref<16x32xf32, #tpu.memory_space<vmem>>, vector<1x8xf32>
    tpu.vector_store %arg7[%c13_119, %c24_120], %196 {strides = array<i32>} : memref<16x32xf32, #tpu.memory_space<vmem>>, vector<1x8xf32>,
    %198 = vector.extract_strided_slice %6 {offsets = [0, 24], sizes = [16, 8], strides = [1, 1]} : vector<16x32xf32> to vector<16x8xf32>
    %199 = vector.extract_strided_slice %7 {offsets = [0, 24], sizes = [16, 8], strides = [1, 1]} : vector<16x32xf32> to vector<16x8xf32>
    %cst_121 = arith.constant dense<0.000000e+00> : vector<16x16xf32>
    %200 = tpu.matmul %198, %199, %cst_121 {dimension_numbers = #tpu.dot_dimension_numbers<[1], [1], [0], [0], [0, 0, 1, 0], [], []>} : vector<16x8xf32>, vector<16x8xf32>, vector<16x16xf32> -> vector<16x16xf32>
    %201 = vector.extract_strided_slice %200 {offsets = [0, 0], sizes = [8, 8], strides = [1, 1]} : vector<16x16xf32> to vector<8x8xf32>
    %cst_122 = arith.constant 2.82842708 : f32
    %202 = vector.broadcast %cst_122 : f32 to vector<8x8xf32>
    %203 = arith.divf %201, %202 : vector<8x8xf32>
    %204 = math.floor %203 : vector<8x8xf32>
    %cst_123 = arith.constant dense<0xFF800000> : vector<8xf32>
    %205 = vector.multi_reduction <maximumf>, %204, %cst_123 [1] : vector<8x8xf32> to vector<8xf32>
    %206 = vector.shape_cast %205 : vector<8xf32> to vector<8x1xf32>
    %207 = vector.broadcast %206 : vector<8x1xf32> to vector<8x8xf32>
    %208 = arith.subf %204, %207 : vector<8x8xf32>
    %209 = math.exp %208 : vector<8x8xf32>
    %cst_124 = arith.constant dense<0.000000e+00> : vector<8xf32>
    %210 = vector.multi_reduction <add>, %209, %cst_124 [1] : vector<8x8xf32> to vector<8xf32>
    %211 = vector.shape_cast %210 : vector<8xf32> to vector<8x1xf32>
    %212 = vector.broadcast %211 : vector<8x1xf32> to vector<8x8xf32>
    %213 = arith.divf %209, %212 : vector<8x8xf32>
    %c0_125 = arith.constant 0 : index
    %c24_126 = arith.constant 24 : index
    %214 = vector.load %arg6[%c0_125, %c24_126] : memref<16x32xf32, #tpu.memory_space<vmem>>, vector<8x8xf32>
    tpu.vector_store %arg6[%c0_125, %c24_126], %213 {strides = array<i32>} : memref<16x32xf32, #tpu.memory_space<vmem>>, vector<8x8xf32>,
    %215 = vector.extract_strided_slice %8 {offsets = [0, 24], sizes = [1, 8], strides = [1, 1]} : vector<16x32xf32> to vector<1x8xf32>
    %c6 = arith.constant 6 : index
    %c0_127 = arith.constant 0 : index
    %216 = vector.load %arg7[%c6, %c0_127] : memref<16x32xf32, #tpu.memory_space<vmem>>, vector<1x8xf32>
    tpu.vector_store %arg7[%c6, %c0_127], %215 {strides = array<i32>} : memref<16x32xf32, #tpu.memory_space<vmem>>, vector<1x8xf32>,
    %217 = vector.extract_strided_slice %8 {offsets = [1, 24], sizes = [1, 8], strides = [1, 1]} : vector<16x32xf32> to vector<1x8xf32>
    %c6_128 = arith.constant 6 : index
    %c8_129 = arith.constant 8 : index
    %218 = vector.load %arg7[%c6_128, %c8_129] : memref<16x32xf32, #tpu.memory_space<vmem>>, vector<1x8xf32>
    tpu.vector_store %arg7[%c6_128, %c8_129], %217 {strides = array<i32>} : memref<16x32xf32, #tpu.memory_space<vmem>>, vector<1x8xf32>,
    %219 = vector.extract_strided_slice %8 {offsets = [2, 24], sizes = [1, 8], strides = [1, 1]} : vector<16x32xf32> to vector<1x8xf32>
    %c6_130 = arith.constant 6 : index
    %c16_131 = arith.constant 16 : index
    %220 = vector.load %arg7[%c6_130, %c16_131] : memref<16x32xf32, #tpu.memory_space<vmem>>, vector<1x8xf32>
    tpu.vector_store %arg7[%c6_130, %c16_131], %219 {strides = array<i32>} : memref<16x32xf32, #tpu.memory_space<vmem>>, vector<1x8xf32>,
    %221 = vector.extract_strided_slice %8 {offsets = [3, 24], sizes = [1, 8], strides = [1, 1]} : vector<16x32xf32> to vector<1x8xf32>
    %c6_132 = arith.constant 6 : index
    %c24_133 = arith.constant 24 : index
    %222 = vector.load %arg7[%c6_132, %c24_133] : memref<16x32xf32, #tpu.memory_space<vmem>>, vector<1x8xf32>
    tpu.vector_store %arg7[%c6_132, %c24_133], %221 {strides = array<i32>} : memref<16x32xf32, #tpu.memory_space<vmem>>, vector<1x8xf32>,
    %223 = vector.extract_strided_slice %8 {offsets = [4, 24], sizes = [1, 8], strides = [1, 1]} : vector<16x32xf32> to vector<1x8xf32>
    %c7 = arith.constant 7 : index
    %c0_134 = arith.constant 0 : index
    %224 = vector.load %arg7[%c7, %c0_134] : memref<16x32xf32, #tpu.memory_space<vmem>>, vector<1x8xf32>
    tpu.vector_store %arg7[%c7, %c0_134], %223 {strides = array<i32>} : memref<16x32xf32, #tpu.memory_space<vmem>>, vector<1x8xf32>,
    %225 = vector.extract_strided_slice %8 {offsets = [5, 24], sizes = [1, 8], strides = [1, 1]} : vector<16x32xf32> to vector<1x8xf32>
    %c7_135 = arith.constant 7 : index
    %c8_136 = arith.constant 8 : index
    %226 = vector.load %arg7[%c7_135, %c8_136] : memref<16x32xf32, #tpu.memory_space<vmem>>, vector<1x8xf32>
    tpu.vector_store %arg7[%c7_135, %c8_136], %225 {strides = array<i32>} : memref<16x32xf32, #tpu.memory_space<vmem>>, vector<1x8xf32>,
    %227 = vector.extract_strided_slice %8 {offsets = [6, 24], sizes = [1, 8], strides = [1, 1]} : vector<16x32xf32> to vector<1x8xf32>
    %c7_137 = arith.constant 7 : index
    %c16_138 = arith.constant 16 : index
    %228 = vector.load %arg7[%c7_137, %c16_138] : memref<16x32xf32, #tpu.memory_space<vmem>>, vector<1x8xf32>
    tpu.vector_store %arg7[%c7_137, %c16_138], %227 {strides = array<i32>} : memref<16x32xf32, #tpu.memory_space<vmem>>, vector<1x8xf32>,
    %229 = vector.extract_strided_slice %8 {offsets = [7, 24], sizes = [1, 8], strides = [1, 1]} : vector<16x32xf32> to vector<1x8xf32>
    %c7_139 = arith.constant 7 : index
    %c24_140 = arith.constant 24 : index
    %230 = vector.load %arg7[%c7_139, %c24_140] : memref<16x32xf32, #tpu.memory_space<vmem>>, vector<1x8xf32>
    tpu.vector_store %arg7[%c7_139, %c24_140], %229 {strides = array<i32>} : memref<16x32xf32, #tpu.memory_space<vmem>>, vector<1x8xf32>,
    %231 = vector.extract_strided_slice %200 {offsets = [8, 8], sizes = [8, 8], strides = [1, 1]} : vector<16x16xf32> to vector<8x8xf32>
    %cst_141 = arith.constant 2.82842708 : f32
    %232 = vector.broadcast %cst_141 : f32 to vector<8x8xf32>
    %233 = arith.divf %231, %232 : vector<8x8xf32>
    %234 = math.floor %233 : vector<8x8xf32>
    %cst_142 = arith.constant dense<0xFF800000> : vector<8xf32>
    %235 = vector.multi_reduction <maximumf>, %234, %cst_142 [1] : vector<8x8xf32> to vector<8xf32>
    %236 = vector.shape_cast %235 : vector<8xf32> to vector<8x1xf32>
    %237 = vector.broadcast %236 : vector<8x1xf32> to vector<8x8xf32>
    %238 = arith.subf %234, %237 : vector<8x8xf32>
    %239 = math.exp %238 : vector<8x8xf32>
    %cst_143 = arith.constant dense<0.000000e+00> : vector<8xf32>
    %240 = vector.multi_reduction <add>, %239, %cst_143 [1] : vector<8x8xf32> to vector<8xf32>
    %241 = vector.shape_cast %240 : vector<8xf32> to vector<8x1xf32>
    %242 = vector.broadcast %241 : vector<8x1xf32> to vector<8x8xf32>
    %243 = arith.divf %239, %242 : vector<8x8xf32>
    %c8_144 = arith.constant 8 : index
    %c24_145 = arith.constant 24 : index
    %244 = vector.load %arg6[%c8_144, %c24_145] : memref<16x32xf32, #tpu.memory_space<vmem>>, vector<8x8xf32>
    tpu.vector_store %arg6[%c8_144, %c24_145], %243 {strides = array<i32>} : memref<16x32xf32, #tpu.memory_space<vmem>>, vector<8x8xf32>,
    %245 = vector.extract_strided_slice %8 {offsets = [8, 24], sizes = [1, 8], strides = [1, 1]} : vector<16x32xf32> to vector<1x8xf32>
    %c14 = arith.constant 14 : index
    %c0_146 = arith.constant 0 : index
    %246 = vector.load %arg7[%c14, %c0_146] : memref<16x32xf32, #tpu.memory_space<vmem>>, vector<1x8xf32>
    tpu.vector_store %arg7[%c14, %c0_146], %245 {strides = array<i32>} : memref<16x32xf32, #tpu.memory_space<vmem>>, vector<1x8xf32>,
    %247 = vector.extract_strided_slice %8 {offsets = [9, 24], sizes = [1, 8], strides = [1, 1]} : vector<16x32xf32> to vector<1x8xf32>
    %c14_147 = arith.constant 14 : index
    %c8_148 = arith.constant 8 : index
    %248 = vector.load %arg7[%c14_147, %c8_148] : memref<16x32xf32, #tpu.memory_space<vmem>>, vector<1x8xf32>
    tpu.vector_store %arg7[%c14_147, %c8_148], %247 {strides = array<i32>} : memref<16x32xf32, #tpu.memory_space<vmem>>, vector<1x8xf32>,
    %249 = vector.extract_strided_slice %8 {offsets = [10, 24], sizes = [1, 8], strides = [1, 1]} : vector<16x32xf32> to vector<1x8xf32>
    %c14_149 = arith.constant 14 : index
    %c16_150 = arith.constant 16 : index
    %250 = vector.load %arg7[%c14_149, %c16_150] : memref<16x32xf32, #tpu.memory_space<vmem>>, vector<1x8xf32>
    tpu.vector_store %arg7[%c14_149, %c16_150], %249 {strides = array<i32>} : memref<16x32xf32, #tpu.memory_space<vmem>>, vector<1x8xf32>,
    %251 = vector.extract_strided_slice %8 {offsets = [11, 24], sizes = [1, 8], strides = [1, 1]} : vector<16x32xf32> to vector<1x8xf32>
    %c14_151 = arith.constant 14 : index
    %c24_152 = arith.constant 24 : index
    %252 = vector.load %arg7[%c14_151, %c24_152] : memref<16x32xf32, #tpu.memory_space<vmem>>, vector<1x8xf32>
    tpu.vector_store %arg7[%c14_151, %c24_152], %251 {strides = array<i32>} : memref<16x32xf32, #tpu.memory_space<vmem>>, vector<1x8xf32>,
    %253 = vector.extract_strided_slice %8 {offsets = [12, 24], sizes = [1, 8], strides = [1, 1]} : vector<16x32xf32> to vector<1x8xf32>
    %c15 = arith.constant 15 : index
    %c0_153 = arith.constant 0 : index
    %254 = vector.load %arg7[%c15, %c0_153] : memref<16x32xf32, #tpu.memory_space<vmem>>, vector<1x8xf32>
    tpu.vector_store %arg7[%c15, %c0_153], %253 {strides = array<i32>} : memref<16x32xf32, #tpu.memory_space<vmem>>, vector<1x8xf32>,
    %255 = vector.extract_strided_slice %8 {offsets = [13, 24], sizes = [1, 8], strides = [1, 1]} : vector<16x32xf32> to vector<1x8xf32>
    %c15_154 = arith.constant 15 : index
    %c8_155 = arith.constant 8 : index
    %256 = vector.load %arg7[%c15_154, %c8_155] : memref<16x32xf32, #tpu.memory_space<vmem>>, vector<1x8xf32>
    tpu.vector_store %arg7[%c15_154, %c8_155], %255 {strides = array<i32>} : memref<16x32xf32, #tpu.memory_space<vmem>>, vector<1x8xf32>,
    %257 = vector.extract_strided_slice %8 {offsets = [14, 24], sizes = [1, 8], strides = [1, 1]} : vector<16x32xf32> to vector<1x8xf32>
    %c15_156 = arith.constant 15 : index
    %c16_157 = arith.constant 16 : index
    %258 = vector.load %arg7[%c15_156, %c16_157] : memref<16x32xf32, #tpu.memory_space<vmem>>, vector<1x8xf32>
    tpu.vector_store %arg7[%c15_156, %c16_157], %257 {strides = array<i32>} : memref<16x32xf32, #tpu.memory_space<vmem>>, vector<1x8xf32>,
    %259 = vector.extract_strided_slice %8 {offsets = [15, 24], sizes = [1, 8], strides = [1, 1]} : vector<16x32xf32> to vector<1x8xf32>
    %c15_158 = arith.constant 15 : index
    %c24_159 = arith.constant 24 : index
    %260 = vector.load %arg7[%c15_158, %c24_159] : memref<16x32xf32, #tpu.memory_space<vmem>>, vector<1x8xf32>
    tpu.vector_store %arg7[%c15_158, %c24_159], %259 {strides = array<i32>} : memref<16x32xf32, #tpu.memory_space<vmem>>, vector<1x8xf32>,
    %c0_160 = arith.constant 0 : index
    %c0_161 = arith.constant 0 : index
    %261 = vector.load %arg7[%c0_160, %c0_161] : memref<16x32xf32, #tpu.memory_space<vmem>>, vector<16x32xf32>
    %c0_162 = arith.constant 0 : index
    %c0_163 = arith.constant 0 : index
    %262 = vector.load %arg3[%c0_162, %c0_163] : memref<32x32xf32, #tpu.memory_space<vmem>>, vector<32x32xf32>
    %cst_164 = arith.constant dense<0.000000e+00> : vector<16x32xf32>
    %263 = tpu.matmul %261, %262, %cst_164 {dimension_numbers = #tpu.dot_dimension_numbers<[1], [0], [0], [1], [0, 0, 1, 1], [], []>} : vector<16x32xf32>, vector<32x32xf32>, vector<16x32xf32> -> vector<16x32xf32>
    %c0_165 = arith.constant 0 : index
    %c0_166 = arith.constant 0 : index
    %264 = vector.load %arg4[%c0_165, %c0_166] : memref<1x32xf32, #tpu.memory_space<vmem>>, vector<1x32xf32>
    %265 = vector.broadcast %264 : vector<1x32xf32> to vector<16x32xf32>
    %266 = arith.addf %263, %265 : vector<16x32xf32>
    %c0_167 = arith.constant 0 : index
    %c0_168 = arith.constant 0 : index
    %267 = vector.load %arg5[%c0_167, %c0_168] : memref<16x32xf32, #tpu.memory_space<vmem>>, vector<16x32xf32>
    tpu.vector_store %arg5[%c0_167, %c0_168], %266 {strides = array<i32>} : memref<16x32xf32, #tpu.memory_space<vmem>>, vector<16x32xf32>,
    return
  }
}

</mosaic_0001>

<bundles_post_ra>
// kernel: multi_head_attention.1
= control target key start
LH: loop header
LB: loop body
LE: loop exit
PB: predicated region body
PF: predicated region fallthrough
CT: control target
= control target key end

     0   :  { %vm44_vm0 = vcmask 785408   ;;  %s1499_s0 = inlined_call_operand.vmem [shape: f32[16,96], index: 0, kind: input, shape index: {}]   ;;  %s1500_s1 = inlined_call_operand.vmem [shape: f32[96,96], index: 1, kind: input, shape index: {}]   ;;  %s1501_s2 = inlined_call_operand.vmem [shape: f32[1,96], index: 2, kind: input, shape index: {}]   ;;  %s1502_s3 = inlined_call_operand.vmem [shape: f32[32,32], index: 3, kind: input, shape index: {}]   ;;  %s1503_s4 = inlined_call_operand.vmem [shape: f32[1,32], index: 4, kind: input, shape index: {}]   ;;  %s1504_s5 = inlined_call_operand.hbm [shape: f32[16,32], index: 5, kind: output, shape index: {0}]   ;;  %s1505_s6 = inlined_call_operand.vmem [shape: f32[16,32], index: 6, kind: output, shape index: {1}]  }
   0x1   :  { %v25_v0 = vld [vmem:[%s1500_s1] sm:$0xff]  ;;  %v26_v1 = vld [vmem:[%s1500_s1 + $0x8] sm:$0xff]  ;;  %v27_v2 = vld [vmem:[%s1500_s1 + $0x10] sm:$0xff] }
   0x2   :  { %v988_v3 = vpack.c.bf16 %v26_v1, %v25_v0  ;;  %v28_v4 = vld [vmem:[%s1500_s1 + $0x18] sm:$0xff]  ;;  %v29_v6 = vld [vmem:[%s1500_s1 + $0x20] sm:$0xff]  ;;  %v30_v7 = vld [vmem:[%s1500_s1 + $0x28] sm:$0xff] }
   0x3   :  { %v992_v5 = vpack.c.bf16 %v28_v4, %v27_v2  ;;  %v23_v8 = vld [vmem:[%s1499_s0] sm:$0xff] }
   0x4   :  { %989 = vmatprep.subr.bf16.mxu0 %v988_v3 }
   0x5   :  { %991 = vmatpush3.bf16.msra.mxu0 %v988_v3 }
   0x6   :  { %12 = vsyncpa [#allocation4], 0  ;;  %993 = vmatprep.subr.bf16.mxu0 %v992_v5  ;;  %v996_v9 = vpack.c.bf16 %v30_v7, %v29_v6  ;;  %946 = vmatprep.mubr.msk.f32.mxu0 %vm44_vm0, %v23_v8  ;;  %v31_v10 = vld [vmem:[%s1500_s1 + $0x30] sm:$0xff]  ;;  %v32_v11 = vld [vmem:[%s1500_s1 + $0x38] sm:$0xff]  ;;  %vm132_vm1 = vcmask 64512   ;;  %s1123_s27 = smov 80  }
   0x7   :  { %v1000_v12 = vpack.c.bf16 %v32_v11, %v31_v10  ;;  %v33_v13 = vld [vmem:[%s1500_s1 + $0x40] sm:$0xff]  ;;  %v34_v14 = vld [vmem:[%s1500_s1 + $0x48] sm:$0xff]  ;;  %v35_v16 = vld [vmem:[%s1500_s1 + $0x50] sm:$0xff]  ;;  %s1124_s28 = smov 72   ;;  %s1126_s29 = smov 112   ;;  %vm234_vm3 = vcmask 57344  }
   0x8   :  { %v1004_v15 = vpack.c.bf16 %v34_v14, %v33_v13  ;;  %v36_v17 = vld [vmem:[%s1500_s1 + $0x58] sm:$0xff]  ;;  %v24_v19 = vld [vmem:[%s1499_s0 + $0x8] sm:$0xff]  ;;  %v864_v20 = vld [vmem:[%s1501_s2] ss:$0 sm:$0xff]  ;;  %s1121_s1 = smov 88   ;;  %s1122_s0 = smov 96  }
   0x9   :  { %995 = vmatpush3.bf16.msra.mxu0 %v992_v5  ;;  %v1008_v18 = vpack.c.bf16 %v36_v17, %v35_v16  ;;  %s1125_s2 = smov 120   ;;  %s1127_s30 = smov 104   ;;  %vm1239_vm2 = vmpackc.low %vm132_vm1, %vm132_vm1  ;;  %vm251_vm4 = vcmask 61444   ;;  %vm239_vm5 = vcmask 123969   ;;  %vm253_vm6 = vcmask 128069   ;;  %v749_v6 = vld [vmem:[%s1502_s3] sm:$0xff] }
   0xa   :  { %997 = vmatprep.subr.bf16.mxu0 %v996_v9  ;;  %s1128_s7 = smov 64   ;;  %s1129_s8 = smov 48   ;;  %vm244_vm7 = vcmask 190594   ;;  %vm255_vm8 = vcmask 194694   ;;  %vm249_vm9 = vcmask 257219   ;;  %vm257_vm10 = vcmask 261319  }
   0xb   :  { %s1130_s9 = smov 56   ;;  %s1131_s10 = smov 40   ;;  %vm760_vm11 = vcmask 261120   ;;  %vm261_vm12 = vcmask 130112   ;;  %v750_v7 = vld [vmem:[%s1502_s3 + $0x8] sm:$0xff]  ;;  %v752_v10 = vld [vmem:[%s1502_s3 + $0x18] sm:$0xff] }
   0xc   :  { %v1036_v8 = vpack.c.bf16 %v750_v7, %v749_v6  ;;  %s1132_s22 = smov 8   ;;  %s1134_s23 = smov 24  }
   0xd   :  { %999 = vmatpush3.bf16.msra.mxu0 %v996_v9  ;;  %v751_v9 = vld [vmem:[%s1502_s3 + $0x10] sm:$0xff]  ;;  %s1135_s24 = smov [#allocation3]  }
   0xe   :  { %1001 = vmatprep.subr.bf16.mxu0 %v1000_v12  ;;  %v1040_v11 = vpack.c.bf16 %v752_v10, %v751_v9  ;;  %s849_s25 = sshll.u32 %s1135_s24, 4  ;;  %s850_s25 = int_to_ptr.vmem [resolvable:$true] %s849_s25 }
   0xf   :  { %s1097_s26 = scalar_lea.vmem %s850_s25, 256  ;;  %p1102_p1 = scmp.lt.s32.totalorder %s850_s25, %s850_s25 }
  0x10   :  { %p1098_p0 = scmp.ne.s32.totalorder %s850_s25, %s1097_s26  ;;  %p1103_p2 = scmp.lt.s32.totalorder %s1097_s26, %s1097_s26 }
  0x11   :  { %1003 = vmatpush3.bf16.msra.mxu0 %v1000_v12 }
  0x12   :  { %1005 = vmatprep.subr.bf16.mxu0 %v1004_v15  ;;  %p1104_p3 = por %p1103_p2, %p1102_p1 }
  0x14   :  { %p1105_p4 = pnand %p1104_p3, %p1098_p0 }
  0x15   :  { %1007 = vmatpush3.bf16.msra.mxu0 %v1004_v15 }
  0x16   :  { %1009 = vmatprep.subr.bf16.mxu0 %v1008_v18 }
  0x19   :  { %1011 = vmatpush3.bf16.msra.mxu0 %v1008_v18 }
  0x1c   :  { %947 = vmatmul.mubr.msk.f32.vlgmr.msra.gmra.mrb[0].mxu0 %vm44_vm0, %v24_v19 }
  0xef   :  { %v948_v21 = vpop.f32.mrb[0].mxu0 }
  0xf0   :  { %v1219_v22 = vadd.f32 %v948_v21, %v864_v20  ;;  %v117_v23 = vpop.f32.mrb[1].mxu0 }
  0xf1   :  { %v118_v24 = vadd.f32 %v864_v20, %v117_v23 }
  0xf2   :  { %294 = vrot.lane.b32.xlu1 %v1219_v22, %s1121_s1 }
  0xf3   :  { %953 = vmatprep.mubr.msk.f32.mxu1 %vm132_vm1, %v118_v24  ;;  %v1060_v25 = vpack.i.bf16 %v1219_v22, %v118_v24 }
  0xf5   :  { %1061 = vrot.lane.b32.xlu0 %v1060_v25, %s1122_s0 }
  0xf6   :  { %241 = vrot.lane.b32.xlu1 %v118_v24, %s1123_s27 }
  0xf9   :  { %246 = vrot.lane.b32.xlu0 %v118_v24, %s1121_s1 }
  0xfa   :  { %236 = vrot.lane.b32.xlu1 %v118_v24, %s1124_s28 }
  0xfd   :  { %290 = vrot.lane.b32.xlu0 %v1219_v22, %s1123_s27 }
  0xfe   :  { %302 = vrot.lane.b32.xlu1 %v118_v24, %s1125_s2 }
 0x101   :  { %286 = vrot.lane.b32.xlu0 %v1219_v22, %s1124_s28 }
 0x102   :  { %447 = vrot.lane.b32.xlu1 %v118_v24, %s1126_s29 }
 0x105   :  { %304 = vrot.lane.b32.xlu0 %v1219_v22, %s1125_s2 }
 0x106   :  { %597 = vrot.lane.b32.xlu1 %v118_v24, %s1127_s30 }
 0x109   :  { %449 = vrot.lane.b32.xlu0 %v1219_v22, %s1126_s29 }
 0x10a   :  { %282 = vrot.lane.b32.xlu1 %v1219_v22, %s1128_s7 }
 0x10d   :  { %599 = vrot.lane.b32.xlu0 %v1219_v22, %s1127_s30 }
 0x10e   :  { %553 = vrot.lane.b32.xlu1 %v118_v24, %s1129_s8 }
 0x111   :  { %436 = vrot.lane.b32.xlu0 %v1219_v22, %s1130_s9 }
 0x115   :  { %231 = vrot.lane.b32.xlu0 %v118_v24, %s1128_s7 }
 0x119   :  { %407 = vrot.lane.b32.xlu0 %v118_v24, %s1130_s9 }
 0x11d   :  { %703 = vrot.lane.b32.xlu0 %v118_v24, %s1131_s10 }
 0x164   :  { %v295_v26 = vpop.permute.xlu1 %294 }
 0x167   :  { %v1062_v27 = vpop.permute.xlu0 %1061 }
 0x168   :  { %v1064_v28 = vunpack.i.h.bf16 %v1062_v27  ;;  %v1063_v29 = vunpack.i.l.bf16 %v1062_v27  ;;  %v1235_v30 = vpop.permute.xlu1 %241 }
 0x16a   :  { %v1012_v32 = vpack.c.bf16 %v1064_v28, %v1063_v29 }
 0x16b   :  { %v1243_v33 = vpop.permute.xlu0 %246 }
 0x16c   :  { %v1018_v34 = vpack.c.bf16 %v295_v26, %v1243_v33  ;;  %v1246_v35 = vpop.permute.xlu1 %236  ;;  %1014 = vmatprep.subr.msk.bf16.mxu1 %vm1239_vm2, %v1012_v32 }
 0x16d   :  { %1017 = vmatpush3.bf16.xpose.msk.msra.mxu1 %vm1239_vm2, %v1012_v32 }
 0x16e   :  { %1020 = vmatprep.subr.msk.bf16.mxu1 %vm1239_vm2, %v1018_v34 }
 0x16f   :  { %v291_v36 = vpop.permute.xlu0 %290 }
 0x170   :  { %v303_v37 = vpop.permute.xlu1 %302  ;;  %v1024_v40 = vpack.c.bf16 %v291_v36, %v1235_v30 }
 0x173   :  { %v1254_v38 = vpop.permute.xlu0 %286 }
 0x174   :  { %v448_v39 = vpop.permute.xlu1 %447  ;;  %954 = vmatmul.mubr.msk.f32.vlgmr.msra.gmra.mrb[0].mxu1 %vm132_vm1, %v1219_v22  ;;  %v1030_v41 = vpack.c.bf16 %v1254_v38, %v1246_v35 }
 0x175   :  { %1023 = vmatpush3.bf16.xpose.msk.msra.mxu1 %vm1239_vm2, %v1018_v34  ;;  %960 = vmatprep.mubr.msk.f32.mxu1 %vm132_vm1, %v303_v37 }
 0x176   :  { %1026 = vmatprep.subr.msk.bf16.mxu1 %vm1239_vm2, %v1024_v40  ;;  %1032 = vmatprep.subr.msk.bf16.mxu0 %vm1239_vm2, %v1030_v41 }
 0x177   :  { %1035 = vmatpush3.bf16.xpose.msk.msra.mxu0 %vm1239_vm2, %v1030_v41  ;;  %v305_v42 = vpop.permute.xlu0 %304 }
 0x178   :  { %v598_v43 = vpop.permute.xlu1 %597 }
 0x179   :  { %974 = vmatprep.mubr.msk.f32.mxu0 %vm132_vm1, %v598_v43 }
 0x17b   :  { %v450_v44 = vpop.permute.xlu0 %449 }
 0x17c   :  { %v1271_v45 = vpop.permute.xlu1 %282  ;;  %961 = vmatmul.mubr.msk.f32.vlgmr.msra.gmra.mrb[2].mxu1 %vm132_vm1, %v305_v42 }
 0x17d   :  { %1029 = vmatpush3.bf16.xpose.msk.msra.mxu1 %vm1239_vm2, %v1024_v40  ;;  %967 = vmatprep.mubr.msk.f32.mxu1 %vm132_vm1, %v448_v39  ;;  %285 = vst.msk [vmem:[#allocation2 + $0x8] sm:$0x1] %vm234_vm3, %v1271_v45 }
 0x17e   :  { %298 = vst.msk [vmem:[#allocation2 + $0x5] sm:$0x10] %vm251_vm4, %v1271_v45  ;;  %1037 = vmatprep.subr.bf16.mxu1 %v1036_v8 }
 0x17f   :  { %289 = vst.msk [vmem:[#allocation2 + $0x7] sm:$0x2] %vm239_vm5, %v1254_v38  ;;  %v600_v46 = vpop.permute.xlu0 %599 }
 0x180   :  { %299 = vst.msk [vmem:[#allocation2 + $0x4] sm:$0x20] %vm253_vm6, %v1254_v38  ;;  %v554_v47 = vpop.permute.xlu1 %553  ;;  %975 = vmatmul.mubr.msk.f32.vlgmr.msra.gmra.mrb[2].mxu0 %vm132_vm1, %v600_v46 }
 0x181   :  { %293 = vst.msk [vmem:[#allocation2 + $0x6] sm:$0x4] %vm244_vm7, %v291_v36 }
 0x182   :  { %300 = vst.msk [vmem:[#allocation2 + $0x3] sm:$0x40] %vm255_vm8, %v291_v36 }
 0x183   :  { %297 = vst.msk [vmem:[#allocation2 + $0x5] sm:$0x8] %vm249_vm9, %v295_v26  ;;  %v1292_v48 = vpop.permute.xlu0 %436 }
 0x184   :  { %301 = vst.msk [vmem:[#allocation2 + $0x2] sm:$0x80] %vm257_vm10, %v295_v26  ;;  %968 = vmatmul.mubr.msk.f32.vlgmr.msra.gmra.mrb[4].mxu1 %vm132_vm1, %v450_v44 }
 0x185   :  { %556 = vst.msk [vmem:[#allocation2 + $0x4] sm:$0x1] %vm234_vm3, %v554_v47  ;;  %439 = vst.msk [vmem:[#allocation2 + $0xa] sm:$0x1] %vm234_vm3, %v1292_v48  ;;  %1039 = vmatpush3.bf16.msra.mxu1 %v1036_v8 }
 0x186   :  { %560 = vst.msk [vmem:[#allocation2 + $0x1] sm:$0x10] %vm251_vm4, %v554_v47  ;;  %443 = vst.msk [vmem:[#allocation2 + $0x7] sm:$0x10] %vm251_vm4, %v1292_v48  ;;  %1041 = vmatprep.subr.bf16.mxu1 %v1040_v11 }
 0x187   :  { %440 = vst.msk [vmem:[#allocation2 + $0x9] sm:$0x2] %vm239_vm5, %v1271_v45  ;;  %v232_v49 = vpop.permute.xlu0 %231 }
 0x188   :  { %444 = vst.msk [vmem:[#allocation2 + $0x6] sm:$0x20] %vm253_vm6, %v1271_v45 }
 0x189   :  { %441 = vst.msk [vmem:[#allocation2 + $0x8] sm:$0x4] %vm244_vm7, %v1254_v38  ;;  %1043 = vmatpush3.bf16.msra.mxu1 %v1040_v11 }
 0x18a   :  { %445 = vst.msk [vmem:[#allocation2 + $0x5] sm:$0x40] %vm255_vm8, %v1254_v38 }
 0x18b   :  { %442 = vst.msk [vmem:[#allocation2 + $0x7] sm:$0x8] %vm249_vm9, %v291_v36  ;;  %v408_v50 = vpop.permute.xlu0 %407 }
 0x18c   :  { %446 = vst.msk [vmem:[#allocation2 + $0x4] sm:$0x80] %vm257_vm10, %v291_v36 }
 0x18d   :  { %235 = vst.msk [vmem:[#allocation2] sm:$0x1] %vm234_vm3, %v232_v49  ;;  %410 = vst.msk [vmem:[#allocation2 + $0x2] sm:$0x1] %vm234_vm3, %v408_v50 }
 0x18e   :  { %252 = vst.msk [vmem:[#allocation2 - $0x3] sm:$0x10] %vm251_vm4, %v232_v49  ;;  %414 = vst.msk [vmem:[#allocation2 - $0x1] sm:$0x10] %vm251_vm4, %v408_v50 }
 0x18f   :  { %240 = vst.msk [vmem:[#allocation2 - $0x1] sm:$0x2] %vm239_vm5, %v1246_v35  ;;  %557 = vst.msk [vmem:[#allocation2 + $0x3] sm:$0x2] %vm239_vm5, %v408_v50  ;;  %v704_v51 = vpop.permute.xlu0 %703 }
 0x190   :  { %254 = vst.msk [vmem:[#allocation2 - $0x4] sm:$0x20] %vm253_vm6, %v1246_v35  ;;  %561 = vst.msk [vmem:[#allocation2] sm:$0x20] %vm253_vm6, %v408_v50 }
 0x191   :  { %245 = vst.msk [vmem:[#allocation2 - $0x2] sm:$0x4] %vm244_vm7, %v1235_v30  ;;  %558 = vst.msk [vmem:[#allocation2 + $0x2] sm:$0x4] %vm244_vm7, %v232_v49 }
 0x192   :  { %256 = vst.msk [vmem:[#allocation2 - $0x5] sm:$0x40] %vm255_vm8, %v1235_v30  ;;  %562 = vst.msk [vmem:[#allocation2 - $0x1] sm:$0x40] %vm255_vm8, %v232_v49 }
 0x193   :  { %250 = vst.msk [vmem:[#allocation2 - $0x3] sm:$0x8] %vm249_vm9, %v1243_v33  ;;  %559 = vst.msk [vmem:[#allocation2 + $0x1] sm:$0x8] %vm249_vm9, %v1246_v35 }
 0x194   :  { %258 = vst.msk [vmem:[#allocation2 - $0x6] sm:$0x80] %vm257_vm10, %v1243_v33  ;;  %563 = vst.msk [vmem:[#allocation2 - $0x2] sm:$0x80] %vm257_vm10, %v1246_v35 }
 0x195   :  { %411 = vst.msk [vmem:[#allocation2 + $0x1] sm:$0x2] %vm239_vm5, %v232_v49 }
 0x196   :  { %415 = vst.msk [vmem:[#allocation2 - $0x2] sm:$0x20] %vm253_vm6, %v232_v49 }
 0x197   :  { %412 = vst.msk [vmem:[#allocation2] sm:$0x4] %vm244_vm7, %v1246_v35 }
 0x198   :  { %416 = vst.msk [vmem:[#allocation2 - $0x3] sm:$0x40] %vm255_vm8, %v1246_v35 }
 0x199   :  { %413 = vst.msk [vmem:[#allocation2 - $0x1] sm:$0x8] %vm249_vm9, %v1235_v30 }
 0x19a   :  { %417 = vst.msk [vmem:[#allocation2 - $0x4] sm:$0x80] %vm257_vm10, %v1235_v30 }
 0x19b   :  { %706 = vst.msk [vmem:[#allocation2 + $0x6] sm:$0x1] %vm234_vm3, %v704_v51 }
 0x19c   :  { %710 = vst.msk [vmem:[#allocation2 + $0x3] sm:$0x10] %vm251_vm4, %v704_v51 }
 0x19d   :  { %707 = vst.msk [vmem:[#allocation2 + $0x5] sm:$0x2] %vm239_vm5, %v554_v47 }
 0x19e   :  { %711 = vst.msk [vmem:[#allocation2 + $0x2] sm:$0x20] %vm253_vm6, %v554_v47 }
 0x19f   :  { %708 = vst.msk [vmem:[#allocation2 + $0x4] sm:$0x4] %vm244_vm7, %v408_v50 }
 0x1a0   :  { %712 = vst.msk [vmem:[#allocation2 + $0x1] sm:$0x40] %vm255_vm8, %v408_v50 }
 0x1a1   :  { %709 = vst.msk [vmem:[#allocation2 + $0x3] sm:$0x8] %vm249_vm9, %v232_v49 }
 0x1a2   :  { %713 = vst.msk [vmem:[#allocation2] sm:$0x80] %vm257_vm10, %v232_v49 }
 0x1a9   :  { %v747_v52 = vld [vmem:[#allocation2] sm:$0xff] }
 0x1aa   :  { %985 = vmatprep.mubr.msk.f32.mxu1 %vm760_vm11, %v747_v52 }
 0x247   :  { %v955_v53 = vpop.f32.mrb[0].mxu1 }
 0x248   :  { %v259_v54 = vmul.f32 0.35355338, %v955_v53  ;;  %v207_v55 = vpop.f32.mrb[1].mxu1 }
 0x249   :  { %v217_v12 = vmul.f32 0.35355338, %v207_v55 }
 0x24a   :  { %v260_v56 = vfloor.f32 %v259_v54 }
 0x24b   :  { %v218_v13 = vfloor.f32 %v217_v12 }
 0x24c   :  { %v262_v57 = vsel %vm261_vm12, %v260_v56, -inf }
 0x24d   :  { %263 = vmax.xlane.f32.xlu1 %v262_v57  ;;  %v219_v19 = vsel %vm132_vm1, %v218_v13, -inf }
 0x24f   :  { %v962_v58 = vpop.f32.mrb[2].mxu1 }
 0x250   :  { %v380_v59 = vpop.f32.mrb[3].mxu1  ;;  %v418_v16 = vmul.f32 0.35355338, %v962_v58 }
 0x251   :  { %v389_v14 = vmul.f32 0.35355338, %v380_v59 }
 0x252   :  { %v419_v20 = vfloor.f32 %v418_v16 }
 0x253   :  { %v976_v60 = vpop.f32.mrb[2].mxu0  ;;  %v390_v17 = vfloor.f32 %v389_v14  ;;  %v883_v14 = vld [vmem:[%s1503_s4] ss:$0 sm:$0xff]  ;;  %s1133_s4 = smov 16  }
 0x254   :  { %v714_v61 = vmul.f32 0.35355338, %v976_v60  ;;  %v675_v62 = vpop.f32.mrb[3].mxu0  ;;  %v420_v25 = vsel %vm261_vm12, %v419_v20, -inf }
 0x255   :  { %v1380_v21 = vmul.f32 0.35355338, %v675_v62 }
 0x256   :  { %v715_v63 = vfloor.f32 %v714_v61 }
 0x257   :  { %v969_v0 = vpop.f32.mrb[4].mxu1  ;;  %v685_v24 = vfloor.f32 %v1380_v21 }
 0x258   :  { %v1353_v1 = vmul.f32 0.35355338, %v969_v0  ;;  %v525_v2 = vpop.f32.mrb[5].mxu1  ;;  %v716_v3 = vsel %vm261_vm12, %v715_v63, -inf }
 0x259   :  { %717 = vmax.xlane.f32.xlu1 %v716_v3  ;;  %v1376_v15 = vmul.f32 0.35355338, %v525_v2  ;;  %v686_v26 = vsel %vm132_vm1, %v685_v24, -inf }
 0x25a   :  { %v565_v4 = vfloor.f32 %v1353_v1 }
 0x25b   :  { %v535_v18 = vfloor.f32 %v1376_v15 }
 0x25c   :  { %v566_v5 = vsel %vm261_vm12, %v565_v4, -inf }
 0x25d   :  { %567 = vmax.xlane.f32.xlu0 %v566_v5  ;;  %v536_v23 = vsel %vm132_vm1, %v535_v18, -inf }
 0x26a   :  { %586 = vrot.lane.b32.xlu1 %v1219_v22, %s1129_s8 }
 0x273   :  { %736 = vrot.lane.b32.xlu0 %v1219_v22, %s1131_s10  ;;  %v391_v22 = vsel %vm132_vm1, %v390_v17, -inf }
 0x28e   :  { %220 = vmax.xlane.f32.xlu1 %v219_v19 }
 0x292   :  { %392 = vmax.xlane.f32.xlu0 %v391_v22  ;;  %537 = vmax.xlane.f32.xlu1 %v536_v23 }
 0x296   :  { %421 = vmax.xlane.f32.xlu0 %v420_v25 }
 0x29a   :  { %687 = vmax.xlane.f32.xlu0 %v686_v26 }
 0x2da   :  { %v264_v27 = vpop.xlane.xlu1 %263 }
 0x2db   :  { %v265_v28 = vsub.f32 %v260_v56, %v264_v27 }
 0x2dd   :  { %v266_v29 = vmul.f32 1.442695, %v265_v28 }
 0x2df   :  { %1065 = vpow2.f32 %v266_v29 }
 0x2e6   :  { %v718_v30 = vpop.xlane.xlu1 %717 }
 0x2e7   :  { %v719_v31 = vsub.f32 %v715_v63, %v718_v30 }
 0x2e9   :  { %v1389_v32 = vpop.eup %1065  ;;  %v720_v33 = vmul.f32 1.442695, %v719_v31 }
 0x2ea   :  { %v587_v34 = vpop.permute.xlu1 %586  ;;  %v568_v35 = vpop.xlane.xlu0 %567  ;;  %269 = vrot.lane.b32.xlu1 %v1389_v32, %s1125_s2 }
 0x2eb   :  { %1067 = vpow2.f32 %v720_v33  ;;  %589 = vst.msk [vmem:[#allocation2 + $0xc] sm:$0x1] %vm234_vm3, %v587_v34  ;;  %v569_v53 = vsub.f32 %v565_v4, %v568_v35 }
 0x2ec   :  { %593 = vst.msk [vmem:[#allocation2 + $0x9] sm:$0x10] %vm251_vm4, %v587_v34 }
 0x2ed   :  { %590 = vst.msk [vmem:[#allocation2 + $0xb] sm:$0x2] %vm239_vm5, %v1292_v48  ;;  %v570_v54 = vmul.f32 1.442695, %v569_v53 }
 0x2ee   :  { %594 = vst.msk [vmem:[#allocation2 + $0x8] sm:$0x20] %vm253_vm6, %v1292_v48  ;;  %v737_v36 = vpop.permute.xlu0 %736 }
 0x2ef   :  { %591 = vst.msk [vmem:[#allocation2 + $0xa] sm:$0x4] %vm244_vm7, %v1271_v45 }
 0x2f0   :  { %595 = vst.msk [vmem:[#allocation2 + $0x7] sm:$0x40] %vm255_vm8, %v1271_v45 }
 0x2f1   :  { %592 = vst.msk [vmem:[#allocation2 + $0x9] sm:$0x8] %vm249_vm9, %v1254_v38 }
 0x2f2   :  { %596 = vst.msk [vmem:[#allocation2 + $0x6] sm:$0x80] %vm257_vm10, %v1254_v38 }
 0x2f3   :  { %739 = vst.msk [vmem:[#allocation2 + $0xe] sm:$0x1] %vm234_vm3, %v737_v36 }
 0x2f4   :  { %743 = vst.msk [vmem:[#allocation2 + $0xb] sm:$0x10] %vm251_vm4, %v737_v36 }
 0x2f5   :  { %740 = vst.msk [vmem:[#allocation2 + $0xd] sm:$0x2] %vm239_vm5, %v587_v34  ;;  %v1419_v37 = vpop.eup %1067 }
 0x2f6   :  { %744 = vst.msk [vmem:[#allocation2 + $0xa] sm:$0x20] %vm253_vm6, %v587_v34  ;;  %723 = vrot.lane.b32.xlu1 %v1419_v37, %s1125_s2 }
 0x2f7   :  { %741 = vst.msk [vmem:[#allocation2 + $0xc] sm:$0x4] %vm244_vm7, %v1292_v48 }
 0x2f8   :  { %745 = vst.msk [vmem:[#allocation2 + $0x9] sm:$0x40] %vm255_vm8, %v1292_v48 }
 0x2f9   :  { %742 = vst.msk [vmem:[#allocation2 + $0xb] sm:$0x8] %vm249_vm9, %v1271_v45 }
 0x2fa   :  { %746 = vst.msk [vmem:[#allocation2 + $0x8] sm:$0x80] %vm257_vm10, %v1271_v45 }
 0x301   :  { %v748_v38 = vld [vmem:[#allocation2 + $0x8] sm:$0xff] }
 0x302   :  { %986 = vmatmul.mubr.msk.f32.vlgmr.msra.gmra.mrb[6].mxu1 %vm760_vm11, %v748_v38 }
 0x31b   :  { %v221_v39 = vpop.xlane.xlu1 %220 }
 0x31c   :  { %v222_v40 = vsub.f32 %v218_v13, %v221_v39 }
 0x31e   :  { %v223_v41 = vmul.f32 1.442695, %v222_v40 }
 0x31f   :  { %v393_v42 = vpop.xlane.xlu0 %392  ;;  %v538_v57 = vpop.xlane.xlu1 %537 }
 0x320   :  { %1069 = vpow2.f32 %v223_v41  ;;  %v394_v43 = vsub.f32 %v390_v17, %v393_v42  ;;  %v539_v59 = vsub.f32 %v535_v18, %v538_v57 }
 0x322   :  { %v395_v44 = vmul.f32 1.442695, %v394_v43  ;;  %v540_v61 = vmul.f32 1.442695, %v539_v59 }
 0x323   :  { %v422_v46 = vpop.xlane.xlu0 %421 }
 0x324   :  { %1071 = vpow2.f32 %v395_v44  ;;  %v423_v47 = vsub.f32 %v419_v20, %v422_v46 }
 0x326   :  { %v424_v48 = vmul.f32 1.442695, %v423_v47 }
 0x327   :  { %v688_v55 = vpop.xlane.xlu0 %687 }
 0x328   :  { %1073 = vpow2.f32 %v424_v48  ;;  %v689_v56 = vsub.f32 %v685_v24, %v688_v55 }
 0x329   :  { %1075 = vpow2.f32 %v570_v54 }
 0x32a   :  { %v1070_v45 = vpop.eup %1069  ;;  %v690_v60 = vmul.f32 1.442695, %v689_v56 }
 0x32b   :  { %v225_v49 = vsel %vm132_vm1, %v1070_v45, 0.0 }
 0x32c   :  { %226 = vadd.xlane.f32.xlu0 %v225_v49  ;;  %1077 = vpow2.f32 %v690_v60 }
 0x32d   :  { %1079 = vpow2.f32 %v540_v61 }
 0x32e   :  { %v1072_v50 = vpop.eup %1071 }
 0x32f   :  { %v397_v51 = vsel %vm132_vm1, %v1072_v50, 0.0 }
 0x330   :  { %398 = vadd.xlane.f32.xlu0 %v397_v51 }
 0x332   :  { %v1426_v52 = vpop.eup %1073 }
 0x333   :  { %427 = vrot.lane.b32.xlu1 %v1426_v52, %s1125_s2  ;;  %v1432_v58 = vpop.eup %1075 }
 0x336   :  { %v1078_v62 = vpop.eup %1077 }
 0x337   :  { %v692_v63 = vsel %vm132_vm1, %v1078_v62, 0.0  ;;  %v1080_v0 = vpop.eup %1079 }
 0x338   :  { %v542_v1 = vsel %vm132_vm1, %v1080_v0, 0.0 }
 0x346   :  { %573 = vrot.lane.b32.xlu0 %v1432_v58, %s1125_s2 }
 0x357   :  { %693 = vadd.xlane.f32.xlu1 %v692_v63 }
 0x35b   :  { %543 = vadd.xlane.f32.xlu1 %v542_v1 }
 0x35c   :  { %v270_v2 = vpop.permute.xlu1 %269 }
 0x35d   :  { %v272_v3 = vsel %vm132_vm1, %v270_v2, 0.0 }
 0x35f   :  { %273 = vadd.xlane.f32.xlu1 %v272_v3 }
 0x368   :  { %v724_v4 = vpop.permute.xlu1 %723 }
 0x369   :  { %v726_v13 = vsel %vm132_vm1, %v724_v4, 0.0 }
 0x3a5   :  { %v428_v5 = vpop.permute.xlu1 %427 }
 0x3a6   :  { %v430_v6 = vsel %vm132_vm1, %v428_v5, 0.0 }
 0x3a7   :  { %431 = vadd.xlane.f32.xlu0 %v430_v6 }
 0x3b9   :  { %v227_v7 = vpop.xlane.xlu0 %226 }
 0x3ba   :  { %1081 = vrcp.f32 %v227_v7 }
 0x3bd   :  { %v399_v8 = vpop.xlane.xlu0 %398 }
 0x3be   :  { %1083 = vrcp.f32 %v399_v8 }
 0x3c1   :  { %v574_v9 = vpop.permute.xlu0 %573 }
 0x3c2   :  { %v576_v10 = vsel %vm132_vm1, %v574_v9, 0.0 }
 0x3c3   :  { %577 = vadd.xlane.f32.xlu1 %v576_v10 }
 0x3c4   :  { %v1082_v11 = vpop.eup %1081 }
 0x3c5   :  { %v229_v12 = vmul.f32 %v1082_v11, %v1070_v45 }
 0x3c7   :  { %727 = vadd.xlane.f32.xlu1 %v726_v13  ;;  %230 = vst.msk [vmem:[%s1505_s6] sm:$0xff] %vm132_vm1, %v229_v12 }
 0x3c8   :  { %v1084_v19 = vpop.eup %1083 }
 0x3c9   :  { %v401_v20 = vmul.f32 %v1084_v19, %v1072_v50 }
 0x3d5   :  { %v987_v15 = vpop.f32.mrb[6].mxu1 }
 0x3d6   :  { %v839_v16 = vadd.f32 %v987_v15, %v883_v14  ;;  %v833_v17 = vpop.f32.mrb[7].mxu1 }
 0x3d7   :  { %v834_v18 = vadd.f32 %v883_v14, %v833_v17 }
 0x3d8   :  { %843 = vst.msk [vmem:[#allocation3 + $0x8] sm:$0xff] %vm760_vm11, %v839_v16  ;;  %403 = vrot.lane.b32.xlu1 %v401_v20, %s1132_s22 }
 0x3d9   :  { %842 = vst.msk [vmem:[#allocation3] sm:$0xff] %vm760_vm11, %v834_v18 }
 0x3e4   :  { %v694_v21 = vpop.xlane.xlu1 %693 }
 0x3e8   :  { %v544_v22 = vpop.xlane.xlu1 %543 }
 0x3e9   :  { %1085 = vrcp.f32 %v544_v22 }
 0x3ea   :  { %1087 = vrcp.f32 %v694_v21 }
 0x3ec   :  { %v274_v23 = vpop.xlane.xlu1 %273 }
 0x3ed   :  { %1089 = vrcp.f32 %v274_v23 }
 0x3f3   :  { %v1086_v24 = vpop.eup %1085 }
 0x3f4   :  { %v546_v25 = vmul.f32 %v1086_v24, %v1080_v0  ;;  %v1088_v26 = vpop.eup %1087 }
 0x3f5   :  { %v696_v28 = vmul.f32 %v1088_v26, %v1078_v62 }
 0x3f6   :  { %548 = vrot.lane.b32.xlu0 %v546_v25, %s1133_s4 }
 0x3f7   :  { %v1090_v27 = vpop.eup %1089 }
 0x3f8   :  { %v276_v29 = vmul.f32 %v1090_v27, %v1389_v32 }
 0x3fa   :  { %698 = vrot.lane.b32.xlu0 %v696_v28, %s1134_s23  ;;  %278 = vrot.lane.b32.xlu1 %v276_v29, %s1125_s2 }
 0x450   :  { %v578_v30 = vpop.xlane.xlu1 %577 }
 0x451   :  { %1091 = vrcp.f32 %v578_v30 }
 0x454   :  { %v728_v31 = vpop.xlane.xlu1 %727 }
 0x455   :  { %1093 = vrcp.f32 %v728_v31 }
 0x456   :  { %1108 = shalt.err (!%p1105_p4)
}
 0x457   :  { %s1109_s27 = scalar_lea.hbm %s1504_s5, 256 }
 0x458   :  { %p1110_p5 = scmp.ne.s32.totalorder %s1504_s5, %s1109_s27  ;;  %p1113_p6 = scmp.lt.u32.totalorder %s1109_s27, %s1504_s5 }
 0x45a   :  { %p1115_p7 = pnand %p1113_p6, %p1110_p5 }
 0x45c   :  { %1118 = shalt.err (!%p1115_p7)
}
 0x45d   :  { %s1136_s7 = smov 128   ;;  %v404_v32 = vpop.permute.xlu1 %403  ;;  %v1092_v33 = vpop.eup %1091  ;;  %vm551_vm13 = vcmask 195712   ;;  %vm701_vm14 = vcmask 261312  }
 0x45e   :  { %855 = dma.vmem_to_hbm [thread:$0]  %s850_s25, 256, %s1504_s5, [#allocation4], %s1136_s7, %s1136_s7, %s1132_s22   ;;  %v432_v34 = vpop.xlane.xlu0 %431  ;;  %v580_v35 = vmul.f32 %v1092_v33, %v1432_v58 }
 0x45f   :  { %406 = vst.msk [vmem:[%s1505_s6] sm:$0xff] %vm261_vm12, %v404_v32  ;;  %v1094_v36 = vpop.eup %1093  ;;  %1095 = vrcp.f32 %v432_v34 }
 0x460   :  { %582 = vrot.lane.b32.xlu1 %v580_v35, %s1132_s22  ;;  %v730_v38 = vmul.f32 %v1094_v36, %v1419_v37 }
 0x462   :  { %732 = vrot.lane.b32.xlu0 %v730_v38, %s1133_s4 }
 0x468   :  { %v549_v39 = vpop.permute.xlu0 %548 }
 0x469   :  { %v1096_v40 = vpop.eup %1095  ;;  %552 = vst.msk [vmem:[%s1505_s6] sm:$0xff] %vm551_vm13, %v549_v39 }
 0x46a   :  { %v434_v42 = vmul.f32 %v1096_v40, %v1426_v52 }
 0x46c   :  { %v699_v41 = vpop.permute.xlu0 %698  ;;  %v279_v43 = vpop.permute.xlu1 %278 }
 0x46d   :  { %702 = vst.msk [vmem:[%s1505_s6] sm:$0xff] %vm701_vm14, %v699_v41 }
 0x46e   :  { %281 = vst.msk [vmem:[%s1505_s6 + $0x8] sm:$0xff] %vm132_vm1, %v279_v43 }
 0x46f   :  { %435 = vst.msk [vmem:[%s1505_s6 + $0x8] sm:$0xff] %vm261_vm12, %v434_v42 }
 0x4d2   :  { %v583_v37 = vpop.permute.xlu1 %582 }
 0x4d3   :  { %585 = vst.msk [vmem:[%s1505_s6 + $0x8] sm:$0xff] %vm551_vm13, %v583_v37 }
 0x4d4   :  { %v733_v44 = vpop.permute.xlu0 %732 }
 0x4d5   :  { %735 = vst.msk [vmem:[%s1505_s6 + $0x8] sm:$0xff] %vm701_vm14, %v733_v44 }
 0x4d6   :  { %1119 = dma.done.wait [#allocation4], 256  }
 0x4d7   :  { %1120 = vsyncadd [#allocation4], 4294967040 }
 0x4d8   :  { %863 = vsyncpa [#allocation4], 1 }

</bundles_post_ra>
